<compile_context>
chip_gen: v7x
topology: tpu7x:2x2x1
jax: 0.10.0
libtpu: 0.0.40
codegen_flags: <defaults>
</compile_context>

<pallas_src>
import functools

import jax
import jax.numpy as jnp
import numpy as np
from jax.experimental import pallas as pl
from jax.experimental.pallas import tpu as pltpu


def _rup(n, m):
    return ((n + m - 1) // m) * m


# ----------------------------- fused Pallas kernel ---------------------------

def _sam_fused_kernel(xu_ref, w123_ref, b123_ref,
                      s1x_ref, t1x_ref, s1u_ref, t1u_ref,
                      w1x_ref, w1u_ref, s2_ref, t2_ref,
                      cw2r_ref, cb2r_ref, o_ref, *, k, rel_p, out_p):
    """One (batch, P-tile) step of the whole SAM forward.

    xu_ref : (1, k*k, Cin_p, Pt)  k*k reflect-padded shifted views of x
    w123   : (2*rel_p + out_p, Cin_p) stacked conv1/conv2/conv3 weights
    s1*/t1*: folded BN1 affine (split per attention piece)
    w1x/w1u: cw_w1 columns split per attention piece
    s2/t2  : folded BN2 affine
    cw2r   : (k*k*out_p, c_w_p) final conv_w weight, kidx-major and
             pre-broadcast over share_planes groups
    o_ref  : (1, out_p, Pt)
    """
    K2 = k * k
    center = (k // 2) * k + (k // 2)           # unshifted view (== x itself)
    Pt = o_ref.shape[2]

    w123 = w123_ref[...]
    b123 = b123_ref[...]

    # Stage 1: stacked 1x1 convs (conv1 | conv2 | conv3) on every shifted view.
    ys = []
    for kk in range(K2):
        xk = xu_ref[0, kk]                                            # (Cin_p, Pt)
        ys.append(jnp.dot(w123, xk, preferred_element_type=jnp.float32) + b123)

    # Stage 2: conv_w first half (BN1 -> ReLU -> 1x1, no bias), decomposed per
    # attention piece so `attention` is never materialized.
    x1 = ys[center][:rel_p]                                           # conv1(x)
    h = jnp.maximum(x1 * s1x_ref[...] + t1x_ref[...], 0.0)
    acc = jnp.dot(w1x_ref[...], h, preferred_element_type=jnp.float32)  # (c_w_p, Pt)
    for kk in range(K2):
        x2k = ys[kk][rel_p:2 * rel_p]                                 # conv2(x) shifted
        hk = jnp.maximum(x2k * s1u_ref[kk] + t1u_ref[kk], 0.0)
        acc = acc + jnp.dot(w1u_ref[kk], hk, preferred_element_type=jnp.float32)

    # Stage 3: conv_w second half (BN2 -> ReLU -> 1x1 conv) fused with the
    # aggregation multiply-accumulate over the k*k footprint.
    h2 = jnp.maximum(acc * s2_ref[...] + t2_ref[...], 0.0)            # (c_w_p, Pt)
    wgt = jnp.dot(cw2r_ref[...], h2,
                  preferred_element_type=jnp.float32) + cb2r_ref[...]  # (K2*out_p, Pt)

    out = jnp.zeros((out_p, Pt), jnp.float32)
    for kk in range(K2):
        x3k = ys[kk][2 * rel_p:2 * rel_p + out_p]                     # conv3(x) shifted
        out = out + x3k * wgt[kk * out_p:(kk + 1) * out_p]
    o_ref[0] = out.astype(o_ref.dtype)


# ------------------------------ JAX glue -------------------------------------

def _unfold_input(x, k):
    """Reflect-pad x by k//2 and gather the k*k shifted views.

    x: (B, C, H, W) -> (B, k*k, C, H*W), kidx = kh*k + kw (nn.Unfold order)."""
    B, C, H, W = x.shape
    pad = k // 2
    xp = jnp.pad(x, ((0, 0), (0, 0), (pad, pad), (pad, pad)), mode="reflect")
    cols = []
    for kh in range(k):
        for kw in range(k):
            cols.append(xp[:, :, kh:kh + H, kw:kw + W].reshape(B, C, H * W))
    return jnp.stack(cols, axis=1)


def _prepare_params(p, k, in_planes, rel, out, share):
    """Pad channels to multiples of 8 and rearrange weights for the fused kernel."""
    K2 = k * k
    c_w = out // share
    cin_p = _rup(in_planes, 8)
    rel_p = _rup(rel, 8)
    out_p = _rup(out, 8)
    c_w_p = _rup(c_w, 8)
    f32 = jnp.float32

    def pad2(w, r, c):
        return jnp.zeros((r, c), f32).at[:w.shape[0], :w.shape[1]].set(w)

    def pad_col(v, r):
        return jnp.zeros((r, 1), f32).at[:v.shape[0], 0].set(v)

    # Stacked conv1/conv2/conv3 (1x1) weights and biases.
    w123 = jnp.concatenate([pad2(p["w1"], rel_p, cin_p),
                            pad2(p["w2"], rel_p, cin_p),
                            pad2(p["w3"], out_p, cin_p)], axis=0)
    b123 = jnp.concatenate([pad_col(p["b1"], rel_p),
                            pad_col(p["b2"], rel_p),
                            pad_col(p["b3"], out_p)], axis=0)

    # BN1 affine, split into the x1 piece and the k*k x2-unfold pieces.
    # attention channel order: [x1 (rel)] then index rel + c*K2 + kidx.
    s1 = p["bn1_scale"].reshape(-1)
    t1 = p["bn1_shift"].reshape(-1)
    s1x = pad_col(s1[:rel], rel_p)
    t1x = pad_col(t1[:rel], rel_p)
    s1u = jnp.zeros((K2, rel_p, 1), f32).at[:, :rel, 0].set(s1[rel:].reshape(rel, K2).T)
    t1u = jnp.zeros((K2, rel_p, 1), f32).at[:, :rel, 0].set(t1[rel:].reshape(rel, K2).T)

    # cw_w1 columns, split the same way.
    cw1 = p["cw_w1"]                                           # (c_w, C0)
    w1x = pad2(cw1[:, :rel], c_w_p, rel_p)
    w1u_m = cw1[:, rel:].reshape(c_w, rel, K2).transpose(2, 0, 1)   # (K2, c_w, rel)
    w1u = jnp.zeros((K2, c_w_p, rel_p), f32).at[:, :c_w, :rel].set(w1u_m)

    s2 = pad_col(p["bn2_scale"].reshape(-1), c_w_p)
    t2 = pad_col(p["bn2_shift"].reshape(-1), c_w_p)

    # Final conv_w layer: cw_w2 row index = cg*K2 + kidx.  Rearrange kidx-major
    # and pre-broadcast over share_planes groups (out channel c -> group c % c_w)
    # so the aggregation weight is produced directly at out_p rows per tap and
    # no jnp.tile / in-kernel sublane shuffle is needed.
    grp = np.arange(out) % c_w
    cw2_m = p["cw_w2"].reshape(c_w, K2, c_w).transpose(1, 0, 2)[:, grp, :]   # (K2, out, c_w)
    cb2_m = p["cw_b2"].reshape(c_w, K2).T[:, grp]                            # (K2, out)
    cw2r = (jnp.zeros((K2, out_p, c_w_p), f32).at[:, :out, :c_w].set(cw2_m)
            .reshape(K2 * out_p, c_w_p))
    cb2r = (jnp.zeros((K2, out_p, 1), f32).at[:, :out, 0].set(cb2_m)
            .reshape(K2 * out_p, 1))

    return dict(w123=w123, b123=b123, s1x=s1x, t1x=t1x, s1u=s1u, t1u=t1u,
                w1x=w1x, w1u=w1u, s2=s2, t2=t2, cw2r=cw2r, cb2r=cb2r,
                dims=(cin_p, rel_p, out_p, c_w_p))


def sam_forward(x, p, *, in_planes, rel_planes, out_planes, share_planes,
                kernel_size=3):
    """SAM forward (sa_type=1, stride=1, dilation=1), fully fused Pallas kernel."""
    B, Cin, H, W = x.shape
    assert Cin == in_planes
    k = kernel_size
    K2 = k * k
    P = H * W

    fp = _prepare_params(p, k, in_planes, rel_planes, out_planes, share_planes)
    cin_p, rel_p, out_p, c_w_p = fp["dims"]

    # Single unfold of the raw input (1x1 convs commute with reflect-pad+shift).
    # Note: SAN's Aggregation with pad_mode=1 uses reflection padding, matching
    # the explicit ReflectionPad2d used on the x2 branch.
    xu = _unfold_input(x, k)                                   # (B, K2, Cin, P)
    if cin_p != Cin:
        xu = jnp.pad(xu, ((0, 0), (0, 0), (0, cin_p - Cin), (0, 0)))

    # Keep the lane axis (P) dense: pad to a multiple of 128 and tile it.
    Pp = _rup(P, 128)
    if Pp != P:
        xu = jnp.pad(xu, ((0, 0), (0, 0), (0, 0), (0, Pp - P)))
    if Pp % 512 == 0 and Pp // 512 >= 2:
        pt = 512
    elif Pp % 256 == 0 and Pp // 256 >= 2:
        pt = 256
    elif Pp % 128 == 0:
        pt = 128
    else:
        pt = Pp
    n_pt = Pp // pt

    kernel = functools.partial(_sam_fused_kernel, k=k, rel_p=rel_p, out_p=out_p)

    out = pl.pallas_call(
        kernel,
        out_shape=jax.ShapeDtypeStruct((B, out_p, Pp), jnp.float32),
        grid_spec=pltpu.PrefetchScalarGridSpec(
            num_scalar_prefetch=0,
            grid=(B, n_pt),
            in_specs=[
                pl.BlockSpec((1, K2, cin_p, pt), lambda b, t: (b, 0, 0, t)),
                pl.BlockSpec(fp["w123"].shape, lambda b, t: (0, 0)),
                pl.BlockSpec(fp["b123"].shape, lambda b, t: (0, 0)),
                pl.BlockSpec(fp["s1x"].shape, lambda b, t: (0, 0)),
                pl.BlockSpec(fp["t1x"].shape, lambda b, t: (0, 0)),
                pl.BlockSpec(fp["s1u"].shape, lambda b, t: (0, 0, 0)),
                pl.BlockSpec(fp["t1u"].shape, lambda b, t: (0, 0, 0)),
                pl.BlockSpec(fp["w1x"].shape, lambda b, t: (0, 0)),
                pl.BlockSpec(fp["w1u"].shape, lambda b, t: (0, 0, 0)),
                pl.BlockSpec(fp["s2"].shape, lambda b, t: (0, 0)),
                pl.BlockSpec(fp["t2"].shape, lambda b, t: (0, 0)),
                pl.BlockSpec(fp["cw2r"].shape, lambda b, t: (0, 0)),
                pl.BlockSpec(fp["cb2r"].shape, lambda b, t: (0, 0)),
            ],
            out_specs=pl.BlockSpec((1, out_p, pt), lambda b, t: (b, 0, t)),
        ),
        compiler_params=pltpu.CompilerParams(
            dimension_semantics=("parallel", "parallel")),
    )(xu, fp["w123"], fp["b123"], fp["s1x"], fp["t1x"], fp["s1u"], fp["t1u"],
      fp["w1x"], fp["w1u"], fp["s2"], fp["t2"], fp["cw2r"], fp["cb2r"])

    return out[:, :out_planes, :P].reshape(B, out_planes, H, W)


# --------------------------- parameter construction --------------------------

def init_params(key, in_planes, rel_planes, out_planes, share_planes, k=3):
    c_w = out_planes // share_planes
    c0 = rel_planes * (k * k + 1)
    c_out2 = k * k * c_w
    eps = 1e-5
    keys = jax.random.split(key, 17)

    def conv_w_init(kk, co, ci):
        return jax.random.normal(kk, (co, ci), jnp.float32) * (1.0 / np.sqrt(ci))

    p = {}
    p["w1"] = conv_w_init(keys[0], rel_planes, in_planes)
    p["b1"] = 0.1 * jax.random.normal(keys[1], (rel_planes,), jnp.float32)
    p["w2"] = conv_w_init(keys[2], rel_planes, in_planes)
    p["b2"] = 0.1 * jax.random.normal(keys[3], (rel_planes,), jnp.float32)
    p["w3"] = conv_w_init(keys[4], out_planes, in_planes)
    p["b3"] = 0.1 * jax.random.normal(keys[5], (out_planes,), jnp.float32)

    # BatchNorm (inference mode) folded into per-channel scale/shift.
    g1 = 1.0 + 0.1 * jax.random.normal(keys[6], (c0,), jnp.float32)
    be1 = 0.1 * jax.random.normal(keys[7], (c0,), jnp.float32)
    rm1 = 0.1 * jax.random.normal(keys[8], (c0,), jnp.float32)
    rv1 = 1.0 + 0.1 * jax.random.uniform(keys[9], (c0,), jnp.float32)
    s1 = g1 / jnp.sqrt(rv1 + eps)
    p["bn1_scale"] = s1.reshape(c0, 1)
    p["bn1_shift"] = (be1 - rm1 * s1).reshape(c0, 1)

    p["cw_w1"] = conv_w_init(keys[10], c_w, c0)   # no bias

    g2 = 1.0 + 0.1 * jax.random.normal(keys[11], (c_w,), jnp.float32)
    be2 = 0.1 * jax.random.normal(keys[12], (c_w,), jnp.float32)
    rm2 = 0.1 * jax.random.normal(keys[13], (c_w,), jnp.float32)
    rv2 = 1.0 + 0.1 * jax.random.uniform(keys[14], (c_w,), jnp.float32)
    s2 = g2 / jnp.sqrt(rv2 + eps)
    p["bn2_scale"] = s2.reshape(c_w, 1)
    p["bn2_shift"] = (be2 - rm2 * s2).reshape(c_w, 1)

    p["cw_w2"] = conv_w_init(keys[15], c_out2, c_w)
    p["cw_b2"] = 0.1 * jax.random.normal(keys[16], (c_out2,), jnp.float32)
    return p


# ----------------------------- pure-JAX reference ----------------------------

def sam_reference(x, p, k=3):
    B, Cin, H, W = x.shape
    P = H * W
    xf = x.reshape(B, Cin, P)

    def c1(xv, w, b):
        return jnp.einsum("oc,bcp->bop", w, xv) + b[None, :, None]

    x1 = c1(xf, p["w1"], p["b1"])
    x2 = c1(xf, p["w2"], p["b2"])
    x3 = c1(xf, p["w3"], p["b3"])
    rel = x1.shape[1]
    out_planes = x3.shape[1]

    def unfold(v):   # (B, C, H, W) -> (B, C, k*k, P), reflect pad k//2
        pad = k // 2
        vp = jnp.pad(v, ((0, 0), (0, 0), (pad, pad), (pad, pad)), mode="reflect")
        cols = [vp[:, :, kh:kh + H, kw:kw + W].reshape(B, -1, P)
                for kh in range(k) for kw in range(k)]
        return jnp.stack(cols, axis=2)

    x2u = unfold(x2.reshape(B, rel, H, W))
    att = jnp.concatenate([x1, x2u.reshape(B, rel * k * k, P)], axis=1)

    h = jnp.maximum(att * p["bn1_scale"][None] + p["bn1_shift"][None], 0.0)
    h = jnp.einsum("oc,bcp->bop", p["cw_w1"], h)
    h = jnp.maximum(h * p["bn2_scale"][None] + p["bn2_shift"][None], 0.0)
    emb = jnp.einsum("oc,bcp->bop", p["cw_w2"], h) + p["cw_b2"][None, :, None]

    c_w = p["cw_w2"].shape[0] // (k * k)
    wgt = emb.reshape(B, c_w, k * k, P)
    x3u = unfold(x3.reshape(B, out_planes, H, W))
    w_tiled = jnp.tile(wgt, (1, out_planes // c_w, 1, 1))
    out = jnp.sum(x3u * w_tiled, axis=2)
    return out.reshape(B, out_planes, H, W)


# --------------------------------- main ---------------------------------------

if __name__ == "__main__":
    key = jax.random.PRNGKey(0)
    kx, kp = jax.random.split(key)

    B, in_planes, H, W = 2, 4, 16, 16
    rel_planes, out_planes, share_planes, ksz = 2, 8, 2, 3

    x = jax.random.normal(kx, (B, in_planes, H, W), jnp.float32)
    params = init_params(kp, in_planes, rel_planes, out_planes, share_planes, ksz)

    fwd = jax.jit(functools.partial(
        sam_forward, in_planes=in_planes, rel_planes=rel_planes,
        out_planes=out_planes, share_planes=share_planes, kernel_size=ksz))

    out = jax.block_until_ready(fwd(x, params))

    ref = sam_reference(x, params, k=ksz)
    assert out.shape == (B, out_planes, H, W)
    np.testing.assert_allclose(np.asarray(out), np.asarray(ref), rtol=1e-3, atol=1e-3)

    print("KERNEL_OK")
</pallas_src>

<mosaic_0001>
module attributes {stable_mosaic.version = 11 : i64} {
  func.func @_sam_fused_kernel(%arg0: i32, %arg1: i32, %arg2: memref<1x9x8x128xf32, #tpu.memory_space<vmem>>, %arg3: memref<24x8xf32, #tpu.memory_space<vmem>>, %arg4: memref<24x1xf32, #tpu.memory_space<vmem>>, %arg5: memref<8x1xf32, #tpu.memory_space<vmem>>, %arg6: memref<8x1xf32, #tpu.memory_space<vmem>>, %arg7: memref<9x8x1xf32, #tpu.memory_space<vmem>>, %arg8: memref<9x8x1xf32, #tpu.memory_space<vmem>>, %arg9: memref<8x8xf32, #tpu.memory_space<vmem>>, %arg10: memref<9x8x8xf32, #tpu.memory_space<vmem>>, %arg11: memref<8x1xf32, #tpu.memory_space<vmem>>, %arg12: memref<8x1xf32, #tpu.memory_space<vmem>>, %arg13: memref<72x8xf32, #tpu.memory_space<vmem>>, %arg14: memref<72x1xf32, #tpu.memory_space<vmem>>, %arg15: memref<1x8x128xf32, #tpu.memory_space<vmem>>) attributes {dimension_semantics = [#tpu.dimension_semantics<parallel>, #tpu.dimension_semantics<parallel>], iteration_bounds = array<i64: 2, 2>, scalar_prefetch = 0 : i64, scratch_operands = 0 : i64, tpu.core_type = #tpu.core_type<tc>, window_params = [{transform_indices = @transform_0, window_bounds = array<i64: 1, 9, 8, 128>}, {pipeline_mode = #tpu.pipeline_mode<synchronous>, transform_indices = @transform_1, window_bounds = array<i64: 24, 8>}, {pipeline_mode = #tpu.pipeline_mode<synchronous>, transform_indices = @transform_2, window_bounds = array<i64: 24, 1>}, {pipeline_mode = #tpu.pipeline_mode<synchronous>, transform_indices = @transform_3, window_bounds = array<i64: 8, 1>}, {pipeline_mode = #tpu.pipeline_mode<synchronous>, transform_indices = @transform_4, window_bounds = array<i64: 8, 1>}, {pipeline_mode = #tpu.pipeline_mode<synchronous>, transform_indices = @transform_5, window_bounds = array<i64: 9, 8, 1>}, {pipeline_mode = #tpu.pipeline_mode<synchronous>, transform_indices = @transform_6, window_bounds = array<i64: 9, 8, 1>}, {pipeline_mode = #tpu.pipeline_mode<synchronous>, transform_indices = @transform_7, window_bounds = array<i64: 8, 8>}, {pipeline_mode = #tpu.pipeline_mode<synchronous>, transform_indices = @transform_8, window_bounds = array<i64: 9, 8, 8>}, {pipeline_mode = #tpu.pipeline_mode<synchronous>, transform_indices = @transform_9, window_bounds = array<i64: 8, 1>}, {pipeline_mode = #tpu.pipeline_mode<synchronous>, transform_indices = @transform_10, window_bounds = array<i64: 8, 1>}, {pipeline_mode = #tpu.pipeline_mode<synchronous>, transform_indices = @transform_11, window_bounds = array<i64: 72, 8>}, {pipeline_mode = #tpu.pipeline_mode<synchronous>, transform_indices = @transform_12, window_bounds = array<i64: 72, 1>}, {transform_indices = @transform_13, window_bounds = array<i64: 1, 8, 128>}]} {
    %c0 = arith.constant 0 : index
    %c0_0 = arith.constant 0 : index
    %0 = vector.load %arg3[%c0, %c0_0] : memref<24x8xf32, #tpu.memory_space<vmem>>, vector<24x8xf32>
    %c0_1 = arith.constant 0 : index
    %c0_2 = arith.constant 0 : index
    %1 = vector.load %arg4[%c0_1, %c0_2] : memref<24x1xf32, #tpu.memory_space<vmem>>, vector<24x1xf32>
    %c0_3 = arith.constant 0 : index
    %c0_4 = arith.constant 0 : index
    %c0_5 = arith.constant 0 : index
    %c0_6 = arith.constant 0 : index
    %2 = vector.load %arg2[%c0_3, %c0_4, %c0_5, %c0_6] : memref<1x9x8x128xf32, #tpu.memory_space<vmem>>, vector<1x1x8x128xf32>
    %3 = vector.shape_cast %2 : vector<1x1x8x128xf32> to vector<8x128xf32>
    %cst = arith.constant dense<0.000000e+00> : vector<24x128xf32>
    %4 = tpu.matmul %0, %3, %cst {dimension_numbers = #tpu.dot_dimension_numbers<[1], [0], [0], [1], [0, 0, 1, 1], [], []>} : vector<24x8xf32>, vector<8x128xf32>, vector<24x128xf32> -> vector<24x128xf32>
    %5 = vector.broadcast %1 : vector<24x1xf32> to vector<24x128xf32>
    %6 = arith.addf %4, %5 : vector<24x128xf32>
    %c0_7 = arith.constant 0 : index
    %c1 = arith.constant 1 : index
    %c0_8 = arith.constant 0 : index
    %c0_9 = arith.constant 0 : index
    %7 = vector.load %arg2[%c0_7, %c1, %c0_8, %c0_9] : memref<1x9x8x128xf32, #tpu.memory_space<vmem>>, vector<1x1x8x128xf32>
    %8 = vector.shape_cast %7 : vector<1x1x8x128xf32> to vector<8x128xf32>
    %cst_10 = arith.constant dense<0.000000e+00> : vector<24x128xf32>
    %9 = tpu.matmul %0, %8, %cst_10 {dimension_numbers = #tpu.dot_dimension_numbers<[1], [0], [0], [1], [0, 0, 1, 1], [], []>} : vector<24x8xf32>, vector<8x128xf32>, vector<24x128xf32> -> vector<24x128xf32>
    %10 = vector.broadcast %1 : vector<24x1xf32> to vector<24x128xf32>
    %11 = arith.addf %9, %10 : vector<24x128xf32>
    %c0_11 = arith.constant 0 : index
    %c2 = arith.constant 2 : index
    %c0_12 = arith.constant 0 : index
    %c0_13 = arith.constant 0 : index
    %12 = vector.load %arg2[%c0_11, %c2, %c0_12, %c0_13] : memref<1x9x8x128xf32, #tpu.memory_space<vmem>>, vector<1x1x8x128xf32>
    %13 = vector.shape_cast %12 : vector<1x1x8x128xf32> to vector<8x128xf32>
    %cst_14 = arith.constant dense<0.000000e+00> : vector<24x128xf32>
    %14 = tpu.matmul %0, %13, %cst_14 {dimension_numbers = #tpu.dot_dimension_numbers<[1], [0], [0], [1], [0, 0, 1, 1], [], []>} : vector<24x8xf32>, vector<8x128xf32>, vector<24x128xf32> -> vector<24x128xf32>
    %15 = vector.broadcast %1 : vector<24x1xf32> to vector<24x128xf32>
    %16 = arith.addf %14, %15 : vector<24x128xf32>
    %c0_15 = arith.constant 0 : index
    %c3 = arith.constant 3 : index
    %c0_16 = arith.constant 0 : index
    %c0_17 = arith.constant 0 : index
    %17 = vector.load %arg2[%c0_15, %c3, %c0_16, %c0_17] : memref<1x9x8x128xf32, #tpu.memory_space<vmem>>, vector<1x1x8x128xf32>
    %18 = vector.shape_cast %17 : vector<1x1x8x128xf32> to vector<8x128xf32>
    %cst_18 = arith.constant dense<0.000000e+00> : vector<24x128xf32>
    %19 = tpu.matmul %0, %18, %cst_18 {dimension_numbers = #tpu.dot_dimension_numbers<[1], [0], [0], [1], [0, 0, 1, 1], [], []>} : vector<24x8xf32>, vector<8x128xf32>, vector<24x128xf32> -> vector<24x128xf32>
    %20 = vector.broadcast %1 : vector<24x1xf32> to vector<24x128xf32>
    %21 = arith.addf %19, %20 : vector<24x128xf32>
    %c0_19 = arith.constant 0 : index
    %c4 = arith.constant 4 : index
    %c0_20 = arith.constant 0 : index
    %c0_21 = arith.constant 0 : index
    %22 = vector.load %arg2[%c0_19, %c4, %c0_20, %c0_21] : memref<1x9x8x128xf32, #tpu.memory_space<vmem>>, vector<1x1x8x128xf32>
    %23 = vector.shape_cast %22 : vector<1x1x8x128xf32> to vector<8x128xf32>
    %cst_22 = arith.constant dense<0.000000e+00> : vector<24x128xf32>
    %24 = tpu.matmul %0, %23, %cst_22 {dimension_numbers = #tpu.dot_dimension_numbers<[1], [0], [0], [1], [0, 0, 1, 1], [], []>} : vector<24x8xf32>, vector<8x128xf32>, vector<24x128xf32> -> vector<24x128xf32>
    %25 = vector.broadcast %1 : vector<24x1xf32> to vector<24x128xf32>
    %26 = arith.addf %24, %25 : vector<24x128xf32>
    %c0_23 = arith.constant 0 : index
    %c5 = arith.constant 5 : index
    %c0_24 = arith.constant 0 : index
    %c0_25 = arith.constant 0 : index
    %27 = vector.load %arg2[%c0_23, %c5, %c0_24, %c0_25] : memref<1x9x8x128xf32, #tpu.memory_space<vmem>>, vector<1x1x8x128xf32>
    %28 = vector.shape_cast %27 : vector<1x1x8x128xf32> to vector<8x128xf32>
    %cst_26 = arith.constant dense<0.000000e+00> : vector<24x128xf32>
    %29 = tpu.matmul %0, %28, %cst_26 {dimension_numbers = #tpu.dot_dimension_numbers<[1], [0], [0], [1], [0, 0, 1, 1], [], []>} : vector<24x8xf32>, vector<8x128xf32>, vector<24x128xf32> -> vector<24x128xf32>
    %30 = vector.broadcast %1 : vector<24x1xf32> to vector<24x128xf32>
    %31 = arith.addf %29, %30 : vector<24x128xf32>
    %c0_27 = arith.constant 0 : index
    %c6 = arith.constant 6 : index
    %c0_28 = arith.constant 0 : index
    %c0_29 = arith.constant 0 : index
    %32 = vector.load %arg2[%c0_27, %c6, %c0_28, %c0_29] : memref<1x9x8x128xf32, #tpu.memory_space<vmem>>, vector<1x1x8x128xf32>
    %33 = vector.shape_cast %32 : vector<1x1x8x128xf32> to vector<8x128xf32>
    %cst_30 = arith.constant dense<0.000000e+00> : vector<24x128xf32>
    %34 = tpu.matmul %0, %33, %cst_30 {dimension_numbers = #tpu.dot_dimension_numbers<[1], [0], [0], [1], [0, 0, 1, 1], [], []>} : vector<24x8xf32>, vector<8x128xf32>, vector<24x128xf32> -> vector<24x128xf32>
    %35 = vector.broadcast %1 : vector<24x1xf32> to vector<24x128xf32>
    %36 = arith.addf %34, %35 : vector<24x128xf32>
    %c0_31 = arith.constant 0 : index
    %c7 = arith.constant 7 : index
    %c0_32 = arith.constant 0 : index
    %c0_33 = arith.constant 0 : index
    %37 = vector.load %arg2[%c0_31, %c7, %c0_32, %c0_33] : memref<1x9x8x128xf32, #tpu.memory_space<vmem>>, vector<1x1x8x128xf32>
    %38 = vector.shape_cast %37 : vector<1x1x8x128xf32> to vector<8x128xf32>
    %cst_34 = arith.constant dense<0.000000e+00> : vector<24x128xf32>
    %39 = tpu.matmul %0, %38, %cst_34 {dimension_numbers = #tpu.dot_dimension_numbers<[1], [0], [0], [1], [0, 0, 1, 1], [], []>} : vector<24x8xf32>, vector<8x128xf32>, vector<24x128xf32> -> vector<24x128xf32>
    %40 = vector.broadcast %1 : vector<24x1xf32> to vector<24x128xf32>
    %41 = arith.addf %39, %40 : vector<24x128xf32>
    %c0_35 = arith.constant 0 : index
    %c8 = arith.constant 8 : index
    %c0_36 = arith.constant 0 : index
    %c0_37 = arith.constant 0 : index
    %42 = vector.load %arg2[%c0_35, %c8, %c0_36, %c0_37] : memref<1x9x8x128xf32, #tpu.memory_space<vmem>>, vector<1x1x8x128xf32>
    %43 = vector.shape_cast %42 : vector<1x1x8x128xf32> to vector<8x128xf32>
    %cst_38 = arith.constant dense<0.000000e+00> : vector<24x128xf32>
    %44 = tpu.matmul %0, %43, %cst_38 {dimension_numbers = #tpu.dot_dimension_numbers<[1], [0], [0], [1], [0, 0, 1, 1], [], []>} : vector<24x8xf32>, vector<8x128xf32>, vector<24x128xf32> -> vector<24x128xf32>
    %45 = vector.broadcast %1 : vector<24x1xf32> to vector<24x128xf32>
    %46 = arith.addf %44, %45 : vector<24x128xf32>
    %47 = vector.extract_strided_slice %26 {offsets = [0, 0], sizes = [8, 128], strides = [1, 1]} : vector<24x128xf32> to vector<8x128xf32>
    %c0_39 = arith.constant 0 : index
    %c0_40 = arith.constant 0 : index
    %48 = vector.load %arg5[%c0_39, %c0_40] : memref<8x1xf32, #tpu.memory_space<vmem>>, vector<8x1xf32>
    %49 = vector.broadcast %48 : vector<8x1xf32> to vector<8x128xf32>
    %50 = arith.mulf %47, %49 : vector<8x128xf32>
    %c0_41 = arith.constant 0 : index
    %c0_42 = arith.constant 0 : index
    %51 = vector.load %arg6[%c0_41, %c0_42] : memref<8x1xf32, #tpu.memory_space<vmem>>, vector<8x1xf32>
    %52 = vector.broadcast %51 : vector<8x1xf32> to vector<8x128xf32>
    %53 = arith.addf %50, %52 : vector<8x128xf32>
    %cst_43 = arith.constant 0.000000e+00 : f32
    %54 = vector.broadcast %cst_43 : f32 to vector<8x128xf32>
    %55 = arith.maximumf %53, %54 : vector<8x128xf32>
    %c0_44 = arith.constant 0 : index
    %c0_45 = arith.constant 0 : index
    %56 = vector.load %arg9[%c0_44, %c0_45] : memref<8x8xf32, #tpu.memory_space<vmem>>, vector<8x8xf32>
    %cst_46 = arith.constant dense<0.000000e+00> : vector<8x128xf32>
    %57 = tpu.matmul %56, %55, %cst_46 {dimension_numbers = #tpu.dot_dimension_numbers<[1], [0], [0], [1], [0, 0, 1, 1], [], []>} : vector<8x8xf32>, vector<8x128xf32>, vector<8x128xf32> -> vector<8x128xf32>
    %58 = vector.extract_strided_slice %6 {offsets = [8, 0], sizes = [8, 128], strides = [1, 1]} : vector<24x128xf32> to vector<8x128xf32>
    %c0_47 = arith.constant 0 : index
    %c0_48 = arith.constant 0 : index
    %c0_49 = arith.constant 0 : index
    %59 = vector.load %arg7[%c0_47, %c0_48, %c0_49] : memref<9x8x1xf32, #tpu.memory_space<vmem>>, vector<1x8x1xf32>
    %60 = vector.shape_cast %59 : vector<1x8x1xf32> to vector<8x1xf32>
    %61 = vector.broadcast %60 : vector<8x1xf32> to vector<8x128xf32>
    %62 = arith.mulf %58, %61 : vector<8x128xf32>
    %c0_50 = arith.constant 0 : index
    %c0_51 = arith.constant 0 : index
    %c0_52 = arith.constant 0 : index
    %63 = vector.load %arg8[%c0_50, %c0_51, %c0_52] : memref<9x8x1xf32, #tpu.memory_space<vmem>>, vector<1x8x1xf32>
    %64 = vector.shape_cast %63 : vector<1x8x1xf32> to vector<8x1xf32>
    %65 = vector.broadcast %64 : vector<8x1xf32> to vector<8x128xf32>
    %66 = arith.addf %62, %65 : vector<8x128xf32>
    %cst_53 = arith.constant 0.000000e+00 : f32
    %67 = vector.broadcast %cst_53 : f32 to vector<8x128xf32>
    %68 = arith.maximumf %66, %67 : vector<8x128xf32>
    %c0_54 = arith.constant 0 : index
    %c0_55 = arith.constant 0 : index
    %c0_56 = arith.constant 0 : index
    %69 = vector.load %arg10[%c0_54, %c0_55, %c0_56] : memref<9x8x8xf32, #tpu.memory_space<vmem>>, vector<1x8x8xf32>
    %70 = vector.shape_cast %69 : vector<1x8x8xf32> to vector<8x8xf32>
    %cst_57 = arith.constant dense<0.000000e+00> : vector<8x128xf32>
    %71 = tpu.matmul %70, %68, %cst_57 {dimension_numbers = #tpu.dot_dimension_numbers<[1], [0], [0], [1], [0, 0, 1, 1], [], []>} : vector<8x8xf32>, vector<8x128xf32>, vector<8x128xf32> -> vector<8x128xf32>
    %72 = arith.addf %57, %71 : vector<8x128xf32>
    %73 = vector.extract_strided_slice %11 {offsets = [8, 0], sizes = [8, 128], strides = [1, 1]} : vector<24x128xf32> to vector<8x128xf32>
    %c1_58 = arith.constant 1 : index
    %c0_59 = arith.constant 0 : index
    %c0_60 = arith.constant 0 : index
    %74 = vector.load %arg7[%c1_58, %c0_59, %c0_60] : memref<9x8x1xf32, #tpu.memory_space<vmem>>, vector<1x8x1xf32>
    %75 = vector.shape_cast %74 : vector<1x8x1xf32> to vector<8x1xf32>
    %76 = vector.broadcast %75 : vector<8x1xf32> to vector<8x128xf32>
    %77 = arith.mulf %73, %76 : vector<8x128xf32>
    %c1_61 = arith.constant 1 : index
    %c0_62 = arith.constant 0 : index
    %c0_63 = arith.constant 0 : index
    %78 = vector.load %arg8[%c1_61, %c0_62, %c0_63] : memref<9x8x1xf32, #tpu.memory_space<vmem>>, vector<1x8x1xf32>
    %79 = vector.shape_cast %78 : vector<1x8x1xf32> to vector<8x1xf32>
    %80 = vector.broadcast %79 : vector<8x1xf32> to vector<8x128xf32>
    %81 = arith.addf %77, %80 : vector<8x128xf32>
    %cst_64 = arith.constant 0.000000e+00 : f32
    %82 = vector.broadcast %cst_64 : f32 to vector<8x128xf32>
    %83 = arith.maximumf %81, %82 : vector<8x128xf32>
    %c1_65 = arith.constant 1 : index
    %c0_66 = arith.constant 0 : index
    %c0_67 = arith.constant 0 : index
    %84 = vector.load %arg10[%c1_65, %c0_66, %c0_67] : memref<9x8x8xf32, #tpu.memory_space<vmem>>, vector<1x8x8xf32>
    %85 = vector.shape_cast %84 : vector<1x8x8xf32> to vector<8x8xf32>
    %cst_68 = arith.constant dense<0.000000e+00> : vector<8x128xf32>
    %86 = tpu.matmul %85, %83, %cst_68 {dimension_numbers = #tpu.dot_dimension_numbers<[1], [0], [0], [1], [0, 0, 1, 1], [], []>} : vector<8x8xf32>, vector<8x128xf32>, vector<8x128xf32> -> vector<8x128xf32>
    %87 = arith.addf %72, %86 : vector<8x128xf32>
    %88 = vector.extract_strided_slice %16 {offsets = [8, 0], sizes = [8, 128], strides = [1, 1]} : vector<24x128xf32> to vector<8x128xf32>
    %c2_69 = arith.constant 2 : index
    %c0_70 = arith.constant 0 : index
    %c0_71 = arith.constant 0 : index
    %89 = vector.load %arg7[%c2_69, %c0_70, %c0_71] : memref<9x8x1xf32, #tpu.memory_space<vmem>>, vector<1x8x1xf32>
    %90 = vector.shape_cast %89 : vector<1x8x1xf32> to vector<8x1xf32>
    %91 = vector.broadcast %90 : vector<8x1xf32> to vector<8x128xf32>
    %92 = arith.mulf %88, %91 : vector<8x128xf32>
    %c2_72 = arith.constant 2 : index
    %c0_73 = arith.constant 0 : index
    %c0_74 = arith.constant 0 : index
    %93 = vector.load %arg8[%c2_72, %c0_73, %c0_74] : memref<9x8x1xf32, #tpu.memory_space<vmem>>, vector<1x8x1xf32>
    %94 = vector.shape_cast %93 : vector<1x8x1xf32> to vector<8x1xf32>
    %95 = vector.broadcast %94 : vector<8x1xf32> to vector<8x128xf32>
    %96 = arith.addf %92, %95 : vector<8x128xf32>
    %cst_75 = arith.constant 0.000000e+00 : f32
    %97 = vector.broadcast %cst_75 : f32 to vector<8x128xf32>
    %98 = arith.maximumf %96, %97 : vector<8x128xf32>
    %c2_76 = arith.constant 2 : index
    %c0_77 = arith.constant 0 : index
    %c0_78 = arith.constant 0 : index
    %99 = vector.load %arg10[%c2_76, %c0_77, %c0_78] : memref<9x8x8xf32, #tpu.memory_space<vmem>>, vector<1x8x8xf32>
    %100 = vector.shape_cast %99 : vector<1x8x8xf32> to vector<8x8xf32>
    %cst_79 = arith.constant dense<0.000000e+00> : vector<8x128xf32>
    %101 = tpu.matmul %100, %98, %cst_79 {dimension_numbers = #tpu.dot_dimension_numbers<[1], [0], [0], [1], [0, 0, 1, 1], [], []>} : vector<8x8xf32>, vector<8x128xf32>, vector<8x128xf32> -> vector<8x128xf32>
    %102 = arith.addf %87, %101 : vector<8x128xf32>
    %103 = vector.extract_strided_slice %21 {offsets = [8, 0], sizes = [8, 128], strides = [1, 1]} : vector<24x128xf32> to vector<8x128xf32>
    %c3_80 = arith.constant 3 : index
    %c0_81 = arith.constant 0 : index
    %c0_82 = arith.constant 0 : index
    %104 = vector.load %arg7[%c3_80, %c0_81, %c0_82] : memref<9x8x1xf32, #tpu.memory_space<vmem>>, vector<1x8x1xf32>
    %105 = vector.shape_cast %104 : vector<1x8x1xf32> to vector<8x1xf32>
    %106 = vector.broadcast %105 : vector<8x1xf32> to vector<8x128xf32>
    %107 = arith.mulf %103, %106 : vector<8x128xf32>
    %c3_83 = arith.constant 3 : index
    %c0_84 = arith.constant 0 : index
    %c0_85 = arith.constant 0 : index
    %108 = vector.load %arg8[%c3_83, %c0_84, %c0_85] : memref<9x8x1xf32, #tpu.memory_space<vmem>>, vector<1x8x1xf32>
    %109 = vector.shape_cast %108 : vector<1x8x1xf32> to vector<8x1xf32>
    %110 = vector.broadcast %109 : vector<8x1xf32> to vector<8x128xf32>
    %111 = arith.addf %107, %110 : vector<8x128xf32>
    %cst_86 = arith.constant 0.000000e+00 : f32
    %112 = vector.broadcast %cst_86 : f32 to vector<8x128xf32>
    %113 = arith.maximumf %111, %112 : vector<8x128xf32>
    %c3_87 = arith.constant 3 : index
    %c0_88 = arith.constant 0 : index
    %c0_89 = arith.constant 0 : index
    %114 = vector.load %arg10[%c3_87, %c0_88, %c0_89] : memref<9x8x8xf32, #tpu.memory_space<vmem>>, vector<1x8x8xf32>
    %115 = vector.shape_cast %114 : vector<1x8x8xf32> to vector<8x8xf32>
    %cst_90 = arith.constant dense<0.000000e+00> : vector<8x128xf32>
    %116 = tpu.matmul %115, %113, %cst_90 {dimension_numbers = #tpu.dot_dimension_numbers<[1], [0], [0], [1], [0, 0, 1, 1], [], []>} : vector<8x8xf32>, vector<8x128xf32>, vector<8x128xf32> -> vector<8x128xf32>
    %117 = arith.addf %102, %116 : vector<8x128xf32>
    %118 = vector.extract_strided_slice %26 {offsets = [8, 0], sizes = [8, 128], strides = [1, 1]} : vector<24x128xf32> to vector<8x128xf32>
    %c4_91 = arith.constant 4 : index
    %c0_92 = arith.constant 0 : index
    %c0_93 = arith.constant 0 : index
    %119 = vector.load %arg7[%c4_91, %c0_92, %c0_93] : memref<9x8x1xf32, #tpu.memory_space<vmem>>, vector<1x8x1xf32>
    %120 = vector.shape_cast %119 : vector<1x8x1xf32> to vector<8x1xf32>
    %121 = vector.broadcast %120 : vector<8x1xf32> to vector<8x128xf32>
    %122 = arith.mulf %118, %121 : vector<8x128xf32>
    %c4_94 = arith.constant 4 : index
    %c0_95 = arith.constant 0 : index
    %c0_96 = arith.constant 0 : index
    %123 = vector.load %arg8[%c4_94, %c0_95, %c0_96] : memref<9x8x1xf32, #tpu.memory_space<vmem>>, vector<1x8x1xf32>
    %124 = vector.shape_cast %123 : vector<1x8x1xf32> to vector<8x1xf32>
    %125 = vector.broadcast %124 : vector<8x1xf32> to vector<8x128xf32>
    %126 = arith.addf %122, %125 : vector<8x128xf32>
    %cst_97 = arith.constant 0.000000e+00 : f32
    %127 = vector.broadcast %cst_97 : f32 to vector<8x128xf32>
    %128 = arith.maximumf %126, %127 : vector<8x128xf32>
    %c4_98 = arith.constant 4 : index
    %c0_99 = arith.constant 0 : index
    %c0_100 = arith.constant 0 : index
    %129 = vector.load %arg10[%c4_98, %c0_99, %c0_100] : memref<9x8x8xf32, #tpu.memory_space<vmem>>, vector<1x8x8xf32>
    %130 = vector.shape_cast %129 : vector<1x8x8xf32> to vector<8x8xf32>
    %cst_101 = arith.constant dense<0.000000e+00> : vector<8x128xf32>
    %131 = tpu.matmul %130, %128, %cst_101 {dimension_numbers = #tpu.dot_dimension_numbers<[1], [0], [0], [1], [0, 0, 1, 1], [], []>} : vector<8x8xf32>, vector<8x128xf32>, vector<8x128xf32> -> vector<8x128xf32>
    %132 = arith.addf %117, %131 : vector<8x128xf32>
    %133 = vector.extract_strided_slice %31 {offsets = [8, 0], sizes = [8, 128], strides = [1, 1]} : vector<24x128xf32> to vector<8x128xf32>
    %c5_102 = arith.constant 5 : index
    %c0_103 = arith.constant 0 : index
    %c0_104 = arith.constant 0 : index
    %134 = vector.load %arg7[%c5_102, %c0_103, %c0_104] : memref<9x8x1xf32, #tpu.memory_space<vmem>>, vector<1x8x1xf32>
    %135 = vector.shape_cast %134 : vector<1x8x1xf32> to vector<8x1xf32>
    %136 = vector.broadcast %135 : vector<8x1xf32> to vector<8x128xf32>
    %137 = arith.mulf %133, %136 : vector<8x128xf32>
    %c5_105 = arith.constant 5 : index
    %c0_106 = arith.constant 0 : index
    %c0_107 = arith.constant 0 : index
    %138 = vector.load %arg8[%c5_105, %c0_106, %c0_107] : memref<9x8x1xf32, #tpu.memory_space<vmem>>, vector<1x8x1xf32>
    %139 = vector.shape_cast %138 : vector<1x8x1xf32> to vector<8x1xf32>
    %140 = vector.broadcast %139 : vector<8x1xf32> to vector<8x128xf32>
    %141 = arith.addf %137, %140 : vector<8x128xf32>
    %cst_108 = arith.constant 0.000000e+00 : f32
    %142 = vector.broadcast %cst_108 : f32 to vector<8x128xf32>
    %143 = arith.maximumf %141, %142 : vector<8x128xf32>
    %c5_109 = arith.constant 5 : index
    %c0_110 = arith.constant 0 : index
    %c0_111 = arith.constant 0 : index
    %144 = vector.load %arg10[%c5_109, %c0_110, %c0_111] : memref<9x8x8xf32, #tpu.memory_space<vmem>>, vector<1x8x8xf32>
    %145 = vector.shape_cast %144 : vector<1x8x8xf32> to vector<8x8xf32>
    %cst_112 = arith.constant dense<0.000000e+00> : vector<8x128xf32>
    %146 = tpu.matmul %145, %143, %cst_112 {dimension_numbers = #tpu.dot_dimension_numbers<[1], [0], [0], [1], [0, 0, 1, 1], [], []>} : vector<8x8xf32>, vector<8x128xf32>, vector<8x128xf32> -> vector<8x128xf32>
    %147 = arith.addf %132, %146 : vector<8x128xf32>
    %148 = vector.extract_strided_slice %36 {offsets = [8, 0], sizes = [8, 128], strides = [1, 1]} : vector<24x128xf32> to vector<8x128xf32>
    %c6_113 = arith.constant 6 : index
    %c0_114 = arith.constant 0 : index
    %c0_115 = arith.constant 0 : index
    %149 = vector.load %arg7[%c6_113, %c0_114, %c0_115] : memref<9x8x1xf32, #tpu.memory_space<vmem>>, vector<1x8x1xf32>
    %150 = vector.shape_cast %149 : vector<1x8x1xf32> to vector<8x1xf32>
    %151 = vector.broadcast %150 : vector<8x1xf32> to vector<8x128xf32>
    %152 = arith.mulf %148, %151 : vector<8x128xf32>
    %c6_116 = arith.constant 6 : index
    %c0_117 = arith.constant 0 : index
    %c0_118 = arith.constant 0 : index
    %153 = vector.load %arg8[%c6_116, %c0_117, %c0_118] : memref<9x8x1xf32, #tpu.memory_space<vmem>>, vector<1x8x1xf32>
    %154 = vector.shape_cast %153 : vector<1x8x1xf32> to vector<8x1xf32>
    %155 = vector.broadcast %154 : vector<8x1xf32> to vector<8x128xf32>
    %156 = arith.addf %152, %155 : vector<8x128xf32>
    %cst_119 = arith.constant 0.000000e+00 : f32
    %157 = vector.broadcast %cst_119 : f32 to vector<8x128xf32>
    %158 = arith.maximumf %156, %157 : vector<8x128xf32>
    %c6_120 = arith.constant 6 : index
    %c0_121 = arith.constant 0 : index
    %c0_122 = arith.constant 0 : index
    %159 = vector.load %arg10[%c6_120, %c0_121, %c0_122] : memref<9x8x8xf32, #tpu.memory_space<vmem>>, vector<1x8x8xf32>
    %160 = vector.shape_cast %159 : vector<1x8x8xf32> to vector<8x8xf32>
    %cst_123 = arith.constant dense<0.000000e+00> : vector<8x128xf32>
    %161 = tpu.matmul %160, %158, %cst_123 {dimension_numbers = #tpu.dot_dimension_numbers<[1], [0], [0], [1], [0, 0, 1, 1], [], []>} : vector<8x8xf32>, vector<8x128xf32>, vector<8x128xf32> -> vector<8x128xf32>
    %162 = arith.addf %147, %161 : vector<8x128xf32>
    %163 = vector.extract_strided_slice %41 {offsets = [8, 0], sizes = [8, 128], strides = [1, 1]} : vector<24x128xf32> to vector<8x128xf32>
    %c7_124 = arith.constant 7 : index
    %c0_125 = arith.constant 0 : index
    %c0_126 = arith.constant 0 : index
    %164 = vector.load %arg7[%c7_124, %c0_125, %c0_126] : memref<9x8x1xf32, #tpu.memory_space<vmem>>, vector<1x8x1xf32>
    %165 = vector.shape_cast %164 : vector<1x8x1xf32> to vector<8x1xf32>
    %166 = vector.broadcast %165 : vector<8x1xf32> to vector<8x128xf32>
    %167 = arith.mulf %163, %166 : vector<8x128xf32>
    %c7_127 = arith.constant 7 : index
    %c0_128 = arith.constant 0 : index
    %c0_129 = arith.constant 0 : index
    %168 = vector.load %arg8[%c7_127, %c0_128, %c0_129] : memref<9x8x1xf32, #tpu.memory_space<vmem>>, vector<1x8x1xf32>
    %169 = vector.shape_cast %168 : vector<1x8x1xf32> to vector<8x1xf32>
    %170 = vector.broadcast %169 : vector<8x1xf32> to vector<8x128xf32>
    %171 = arith.addf %167, %170 : vector<8x128xf32>
    %cst_130 = arith.constant 0.000000e+00 : f32
    %172 = vector.broadcast %cst_130 : f32 to vector<8x128xf32>
    %173 = arith.maximumf %171, %172 : vector<8x128xf32>
    %c7_131 = arith.constant 7 : index
    %c0_132 = arith.constant 0 : index
    %c0_133 = arith.constant 0 : index
    %174 = vector.load %arg10[%c7_131, %c0_132, %c0_133] : memref<9x8x8xf32, #tpu.memory_space<vmem>>, vector<1x8x8xf32>
    %175 = vector.shape_cast %174 : vector<1x8x8xf32> to vector<8x8xf32>
    %cst_134 = arith.constant dense<0.000000e+00> : vector<8x128xf32>
    %176 = tpu.matmul %175, %173, %cst_134 {dimension_numbers = #tpu.dot_dimension_numbers<[1], [0], [0], [1], [0, 0, 1, 1], [], []>} : vector<8x8xf32>, vector<8x128xf32>, vector<8x128xf32> -> vector<8x128xf32>
    %177 = arith.addf %162, %176 : vector<8x128xf32>
    %178 = vector.extract_strided_slice %46 {offsets = [8, 0], sizes = [8, 128], strides = [1, 1]} : vector<24x128xf32> to vector<8x128xf32>
    %c8_135 = arith.constant 8 : index
    %c0_136 = arith.constant 0 : index
    %c0_137 = arith.constant 0 : index
    %179 = vector.load %arg7[%c8_135, %c0_136, %c0_137] : memref<9x8x1xf32, #tpu.memory_space<vmem>>, vector<1x8x1xf32>
    %180 = vector.shape_cast %179 : vector<1x8x1xf32> to vector<8x1xf32>
    %181 = vector.broadcast %180 : vector<8x1xf32> to vector<8x128xf32>
    %182 = arith.mulf %178, %181 : vector<8x128xf32>
    %c8_138 = arith.constant 8 : index
    %c0_139 = arith.constant 0 : index
    %c0_140 = arith.constant 0 : index
    %183 = vector.load %arg8[%c8_138, %c0_139, %c0_140] : memref<9x8x1xf32, #tpu.memory_space<vmem>>, vector<1x8x1xf32>
    %184 = vector.shape_cast %183 : vector<1x8x1xf32> to vector<8x1xf32>
    %185 = vector.broadcast %184 : vector<8x1xf32> to vector<8x128xf32>
    %186 = arith.addf %182, %185 : vector<8x128xf32>
    %cst_141 = arith.constant 0.000000e+00 : f32
    %187 = vector.broadcast %cst_141 : f32 to vector<8x128xf32>
    %188 = arith.maximumf %186, %187 : vector<8x128xf32>
    %c8_142 = arith.constant 8 : index
    %c0_143 = arith.constant 0 : index
    %c0_144 = arith.constant 0 : index
    %189 = vector.load %arg10[%c8_142, %c0_143, %c0_144] : memref<9x8x8xf32, #tpu.memory_space<vmem>>, vector<1x8x8xf32>
    %190 = vector.shape_cast %189 : vector<1x8x8xf32> to vector<8x8xf32>
    %cst_145 = arith.constant dense<0.000000e+00> : vector<8x128xf32>
    %191 = tpu.matmul %190, %188, %cst_145 {dimension_numbers = #tpu.dot_dimension_numbers<[1], [0], [0], [1], [0, 0, 1, 1], [], []>} : vector<8x8xf32>, vector<8x128xf32>, vector<8x128xf32> -> vector<8x128xf32>
    %192 = arith.addf %177, %191 : vector<8x128xf32>
    %c0_146 = arith.constant 0 : index
    %c0_147 = arith.constant 0 : index
    %193 = vector.load %arg11[%c0_146, %c0_147] : memref<8x1xf32, #tpu.memory_space<vmem>>, vector<8x1xf32>
    %194 = vector.broadcast %193 : vector<8x1xf32> to vector<8x128xf32>
    %195 = arith.mulf %192, %194 : vector<8x128xf32>
    %c0_148 = arith.constant 0 : index
    %c0_149 = arith.constant 0 : index
    %196 = vector.load %arg12[%c0_148, %c0_149] : memref<8x1xf32, #tpu.memory_space<vmem>>, vector<8x1xf32>
    %197 = vector.broadcast %196 : vector<8x1xf32> to vector<8x128xf32>
    %198 = arith.addf %195, %197 : vector<8x128xf32>
    %cst_150 = arith.constant 0.000000e+00 : f32
    %199 = vector.broadcast %cst_150 : f32 to vector<8x128xf32>
    %200 = arith.maximumf %198, %199 : vector<8x128xf32>
    %c0_151 = arith.constant 0 : index
    %c0_152 = arith.constant 0 : index
    %201 = vector.load %arg13[%c0_151, %c0_152] : memref<72x8xf32, #tpu.memory_space<vmem>>, vector<72x8xf32>
    %cst_153 = arith.constant dense<0.000000e+00> : vector<72x128xf32>
    %202 = tpu.matmul %201, %200, %cst_153 {dimension_numbers = #tpu.dot_dimension_numbers<[1], [0], [0], [1], [0, 0, 1, 1], [], []>} : vector<72x8xf32>, vector<8x128xf32>, vector<72x128xf32> -> vector<72x128xf32>
    %c0_154 = arith.constant 0 : index
    %c0_155 = arith.constant 0 : index
    %203 = vector.load %arg14[%c0_154, %c0_155] : memref<72x1xf32, #tpu.memory_space<vmem>>, vector<72x1xf32>
    %204 = vector.broadcast %203 : vector<72x1xf32> to vector<72x128xf32>
    %205 = arith.addf %202, %204 : vector<72x128xf32>
    %cst_156 = arith.constant 0.000000e+00 : f32
    %206 = vector.broadcast %cst_156 : f32 to vector<8x128xf32>
    %207 = vector.extract_strided_slice %6 {offsets = [16, 0], sizes = [8, 128], strides = [1, 1]} : vector<24x128xf32> to vector<8x128xf32>
    %208 = vector.extract_strided_slice %205 {offsets = [0, 0], sizes = [8, 128], strides = [1, 1]} : vector<72x128xf32> to vector<8x128xf32>
    %209 = arith.mulf %207, %208 : vector<8x128xf32>
    %210 = arith.addf %206, %209 : vector<8x128xf32>
    %211 = vector.extract_strided_slice %11 {offsets = [16, 0], sizes = [8, 128], strides = [1, 1]} : vector<24x128xf32> to vector<8x128xf32>
    %212 = vector.extract_strided_slice %205 {offsets = [8, 0], sizes = [8, 128], strides = [1, 1]} : vector<72x128xf32> to vector<8x128xf32>
    %213 = arith.mulf %211, %212 : vector<8x128xf32>
    %214 = arith.addf %210, %213 : vector<8x128xf32>
    %215 = vector.extract_strided_slice %16 {offsets = [16, 0], sizes = [8, 128], strides = [1, 1]} : vector<24x128xf32> to vector<8x128xf32>
    %216 = vector.extract_strided_slice %205 {offsets = [16, 0], sizes = [8, 128], strides = [1, 1]} : vector<72x128xf32> to vector<8x128xf32>
    %217 = arith.mulf %215, %216 : vector<8x128xf32>
    %218 = arith.addf %214, %217 : vector<8x128xf32>
    %219 = vector.extract_strided_slice %21 {offsets = [16, 0], sizes = [8, 128], strides = [1, 1]} : vector<24x128xf32> to vector<8x128xf32>
    %220 = vector.extract_strided_slice %205 {offsets = [24, 0], sizes = [8, 128], strides = [1, 1]} : vector<72x128xf32> to vector<8x128xf32>
    %221 = arith.mulf %219, %220 : vector<8x128xf32>
    %222 = arith.addf %218, %221 : vector<8x128xf32>
    %223 = vector.extract_strided_slice %26 {offsets = [16, 0], sizes = [8, 128], strides = [1, 1]} : vector<24x128xf32> to vector<8x128xf32>
    %224 = vector.extract_strided_slice %205 {offsets = [32, 0], sizes = [8, 128], strides = [1, 1]} : vector<72x128xf32> to vector<8x128xf32>
    %225 = arith.mulf %223, %224 : vector<8x128xf32>
    %226 = arith.addf %222, %225 : vector<8x128xf32>
    %227 = vector.extract_strided_slice %31 {offsets = [16, 0], sizes = [8, 128], strides = [1, 1]} : vector<24x128xf32> to vector<8x128xf32>
    %228 = vector.extract_strided_slice %205 {offsets = [40, 0], sizes = [8, 128], strides = [1, 1]} : vector<72x128xf32> to vector<8x128xf32>
    %229 = arith.mulf %227, %228 : vector<8x128xf32>
    %230 = arith.addf %226, %229 : vector<8x128xf32>
    %231 = vector.extract_strided_slice %36 {offsets = [16, 0], sizes = [8, 128], strides = [1, 1]} : vector<24x128xf32> to vector<8x128xf32>
    %232 = vector.extract_strided_slice %205 {offsets = [48, 0], sizes = [8, 128], strides = [1, 1]} : vector<72x128xf32> to vector<8x128xf32>
    %233 = arith.mulf %231, %232 : vector<8x128xf32>
    %234 = arith.addf %230, %233 : vector<8x128xf32>
    %235 = vector.extract_strided_slice %41 {offsets = [16, 0], sizes = [8, 128], strides = [1, 1]} : vector<24x128xf32> to vector<8x128xf32>
    %236 = vector.extract_strided_slice %205 {offsets = [56, 0], sizes = [8, 128], strides = [1, 1]} : vector<72x128xf32> to vector<8x128xf32>
    %237 = arith.mulf %235, %236 : vector<8x128xf32>
    %238 = arith.addf %234, %237 : vector<8x128xf32>
    %239 = vector.extract_strided_slice %46 {offsets = [16, 0], sizes = [8, 128], strides = [1, 1]} : vector<24x128xf32> to vector<8x128xf32>
    %240 = vector.extract_strided_slice %205 {offsets = [64, 0], sizes = [8, 128], strides = [1, 1]} : vector<72x128xf32> to vector<8x128xf32>
    %241 = arith.mulf %239, %240 : vector<8x128xf32>
    %242 = arith.addf %238, %241 : vector<8x128xf32>
    %c0_157 = arith.constant 0 : index
    %c0_158 = arith.constant 0 : index
    %c0_159 = arith.constant 0 : index
    %243 = vector.load %arg15[%c0_157, %c0_158, %c0_159] : memref<1x8x128xf32, #tpu.memory_space<vmem>>, vector<1x8x128xf32>
    %244 = vector.shape_cast %243 : vector<1x8x128xf32> to vector<8x128xf32>
    %245 = vector.shape_cast %242 : vector<8x128xf32> to vector<1x8x128xf32>
    tpu.vector_store %arg15[%c0_157, %c0_158, %c0_159], %245 {strides = array<i32>} : memref<1x8x128xf32, #tpu.memory_space<vmem>>, vector<1x8x128xf32>,
    return
  }
  func.func @transform_0(%arg0: i32, %arg1: i32) -> (i32, i32, i32, i32) {
    %c0_i32 = arith.constant 0 : i32
    %c0_i32_0 = arith.constant 0 : i32
    %c0_i32_1 = arith.constant 0 : i32
    return %arg0, %c0_i32, %c0_i32_0, %arg1 : i32, i32, i32, i32
  }
  func.func @transform_1(%arg0: i32, %arg1: i32) -> (i32, i32) {
    %c0_i32 = arith.constant 0 : i32
    %c0_i32_0 = arith.constant 0 : i32
    %c0_i32_1 = arith.constant 0 : i32
    return %c0_i32, %c0_i32_0 : i32, i32
  }
  func.func @transform_2(%arg0: i32, %arg1: i32) -> (i32, i32) {
    %c0_i32 = arith.constant 0 : i32
    %c0_i32_0 = arith.constant 0 : i32
    %c0_i32_1 = arith.constant 0 : i32
    return %c0_i32, %c0_i32_0 : i32, i32
  }
  func.func @transform_3(%arg0: i32, %arg1: i32) -> (i32, i32) {
    %c0_i32 = arith.constant 0 : i32
    %c0_i32_0 = arith.constant 0 : i32
    %c0_i32_1 = arith.constant 0 : i32
    return %c0_i32, %c0_i32_0 : i32, i32
  }
  func.func @transform_4(%arg0: i32, %arg1: i32) -> (i32, i32) {
    %c0_i32 = arith.constant 0 : i32
    %c0_i32_0 = arith.constant 0 : i32
    %c0_i32_1 = arith.constant 0 : i32
    return %c0_i32, %c0_i32_0 : i32, i32
  }
  func.func @transform_5(%arg0: i32, %arg1: i32) -> (i32, i32, i32) {
    %c0_i32 = arith.constant 0 : i32
    %c0_i32_0 = arith.constant 0 : i32
    %c0_i32_1 = arith.constant 0 : i32
    %c0_i32_2 = arith.constant 0 : i32
    return %c0_i32, %c0_i32_0, %c0_i32_1 : i32, i32, i32
  }
  func.func @transform_6(%arg0: i32, %arg1: i32) -> (i32, i32, i32) {
    %c0_i32 = arith.constant 0 : i32
    %c0_i32_0 = arith.constant 0 : i32
    %c0_i32_1 = arith.constant 0 : i32
    %c0_i32_2 = arith.constant 0 : i32
    return %c0_i32, %c0_i32_0, %c0_i32_1 : i32, i32, i32
  }
  func.func @transform_7(%arg0: i32, %arg1: i32) -> (i32, i32) {
    %c0_i32 = arith.constant 0 : i32
    %c0_i32_0 = arith.constant 0 : i32
    %c0_i32_1 = arith.constant 0 : i32
    return %c0_i32, %c0_i32_0 : i32, i32
  }
  func.func @transform_8(%arg0: i32, %arg1: i32) -> (i32, i32, i32) {
    %c0_i32 = arith.constant 0 : i32
    %c0_i32_0 = arith.constant 0 : i32
    %c0_i32_1 = arith.constant 0 : i32
    %c0_i32_2 = arith.constant 0 : i32
    return %c0_i32, %c0_i32_0, %c0_i32_1 : i32, i32, i32
  }
  func.func @transform_9(%arg0: i32, %arg1: i32) -> (i32, i32) {
    %c0_i32 = arith.constant 0 : i32
    %c0_i32_0 = arith.constant 0 : i32
    %c0_i32_1 = arith.constant 0 : i32
    return %c0_i32, %c0_i32_0 : i32, i32
  }
  func.func @transform_10(%arg0: i32, %arg1: i32) -> (i32, i32) {
    %c0_i32 = arith.constant 0 : i32
    %c0_i32_0 = arith.constant 0 : i32
    %c0_i32_1 = arith.constant 0 : i32
    return %c0_i32, %c0_i32_0 : i32, i32
  }
  func.func @transform_11(%arg0: i32, %arg1: i32) -> (i32, i32) {
    %c0_i32 = arith.constant 0 : i32
    %c0_i32_0 = arith.constant 0 : i32
    %c0_i32_1 = arith.constant 0 : i32
    return %c0_i32, %c0_i32_0 : i32, i32
  }
  func.func @transform_12(%arg0: i32, %arg1: i32) -> (i32, i32) {
    %c0_i32 = arith.constant 0 : i32
    %c0_i32_0 = arith.constant 0 : i32
    %c0_i32_1 = arith.constant 0 : i32
    return %c0_i32, %c0_i32_0 : i32, i32
  }
  func.func @transform_13(%arg0: i32, %arg1: i32) -> (i32, i32, i32) {
    %c0_i32 = arith.constant 0 : i32
    %c0_i32_0 = arith.constant 0 : i32
    return %arg0, %c0_i32, %arg1 : i32, i32, i32
  }
}

</mosaic_0001>

<bundles_post_ra>
// kernel: sam_forward.1
= control target key start
LH: loop header
LB: loop body
LE: loop exit
PB: predicated region body
PF: predicated region fallthrough
CT: control target
= control target key end

     0   :  { %s3591_s0 = inlined_call_operand.vmem [shape: f32[2,9,8,256], index: 0, kind: input, shape index: {}]   ;;  %s3592_s1 = inlined_call_operand.vmem [shape: f32[24,8], index: 1, kind: input, shape index: {}]   ;;  %s3593_s2 = inlined_call_operand.vmem [shape: f32[24,1], index: 2, kind: input, shape index: {}]   ;;  %s3594_s3 = inlined_call_operand.vmem [shape: f32[8,1], index: 3, kind: input, shape index: {}]   ;;  %s3595_s4 = inlined_call_operand.vmem [shape: f32[8,1], index: 4, kind: input, shape index: {}]   ;;  %s3596_s5 = inlined_call_operand.vmem [shape: f32[9,8,1], index: 5, kind: input, shape index: {}]   ;;  %s3597_s6 = inlined_call_operand.vmem [shape: f32[9,8,1], index: 6, kind: input, shape index: {}]   ;;  %s3598_s7 = inlined_call_operand.vmem [shape: f32[8,8], index: 7, kind: input, shape index: {}]   ;;  %s3599_s8 = inlined_call_operand.vmem [shape: f32[9,8,8], index: 8, kind: input, shape index: {}]   ;;  %s3600_s9 = inlined_call_operand.vmem [shape: f32[8,1], index: 9, kind: input, shape index: {}]   ;;  %s3601_s10 = inlined_call_operand.vmem [shape: f32[8,1], index: 10, kind: input, shape index: {}]   ;;  %s3602_s11 = inlined_call_operand.vmem [shape: f32[72,8], index: 11, kind: input, shape index: {}]   ;;  %s3603_s12 = inlined_call_operand.vmem [shape: f32[72,1], index: 12, kind: input, shape index: {}]   ;;  %s3604_s13 = inlined_call_operand.vmem [shape: f32[2,8,256], index: 13, kind: output, shape index: {}]  }
   0x1   :  { %3608 = sst [smem:[#allocation6_spill]] %s3604_s13 }
   0x2   :  { %s3080_s25 = smov 0   ;;  %s3082_s26 = smov 0  }
   0x3   :  { %s3084_s27 = smov 0   ;;  %s3086_s28 = smov 0  }
   0x4   :  { %s3088_s29 = smov 0   ;;  %s3090_s30 = smov 0  }
   0x5   :  { %s3092_s14 = smov 0  }
   0x6 LB: > { %3609 = sst [smem:[#allocation3_spill]] %s2989_s27  ;;  %s32_s15 = sadd.s32 1, %s2997_s29  ;;  %s3005_s14 = sphi %s3092_s14, %s23_s14   ;;  %s3001_s30 = sphi %s3090_s30, %s3621_s30   ;;  %s2997_s29 = sphi %s3088_s29, %s3620_s29   ;;  %s2993_s28 = sphi %s3086_s28, %s3619_s28   ;;  %s2989_s27 = sphi %s3084_s27, %s3618_s27   ;;  %s2985_s26 = sphi %s3082_s26, %s3617_s26   ;;  %s2981_s25 = sphi %s3080_s25, %s3616_s25  }
   0x7   : > { %3610 = sst [smem:[#allocation4_spill]] %s2993_s28  ;;  %p33_p0 = scmp.ge.s32.totalorder %s32_s15, 2 }
   0x8   : > { %s35_s16 = sadd.s32 1, %s3001_s30  ;;  %p51_p1 = scmp.ne.s32.totalorder %s2985_s26, %s2981_s25 }
   0x9   : > { %p52_p2 = scmp.eq.s32.totalorder %s3005_s14, 0  ;;  %s3623_s15 = smov (%p33_p0, %s32_s15), 0 }
   0xa   : > { %3611 = sst [smem:[#allocation5_spill]] %s3623_s15  ;;  %s3625_s16 = smov (!%p33_p0, %s35_s16), %s3001_s30 }
   0xb   : > { %p53_p3 = por %p52_p2, %p51_p1  ;;  %p37_p4 = scmp.ge.s32.totalorder %s3625_s16, 2 }
   0xc   : > { %s40_s17 = ssub.s32 %s2997_s29, %s3623_s15  ;;  %s44_s20 = sadd.s32 1, %s2985_s26 }
   0xd   : > { %s3627_s16 = smov (%p37_p4, %s3625_s16), 0  ;;  %p2538_p6 = scmp.ge.s32.totalorder %s3005_s14, 4 }
   0xe   : > { %s39_s18 = ssub.s32 %s3001_s30, %s3627_s16 }
   0xf   : > { %s41_s19 = sor.u32 %s40_s17, %s39_s18  ;;  %393 = sbr.rel (%p2538_p6) target bundleno = 34 (0x22), region = 64 }
  0x10   : > { %p42_p5 = scmp.eq.s32.totalorder %s41_s19, 0 }
  0x12   : > { %s3131_s21 = scalar_select %p42_p5, %s2985_s26, %s44_s20  }
  0x16   : > { %396 = sbr.rel (!%p53_p3) target bundleno = 34 (0x22), region = 68  ;;  %s398_s22 = sand.u32 (%p53_p3), 1, %s2985_s26  }
  0x17   : > { %s2888_s23 = smul.u32 (%p53_p3), 18, %s3001_s30 }
  0x18   : > { %s2887_s24 = smul.u32 (%p53_p3), 72, %s398_s22 }
  0x19   : > { %s402_s15 = sadd.s32 (%p53_p3), %s2997_s29, %s2888_s23 }
  0x1a   : > { %s2539_s13 = sshll.u32 (%p53_p3), %s402_s15, 3  ;;  %s400_s18 = scalar_lea.vmem (%p53_p3), [#allocation2], %s2887_s24 }
  0x1b   : > { %s404_s17 = scalar_lea.vmem (%p53_p3), %s3591_s0, %s2539_s13 }
  0x1c   : > { %v448_v0 = vld [vmem:[%s404_s17] sm:$0xff] (%p53_p3)  ;;  %v450_v1 = vld [vmem:[%s404_s17 + $0x10] sm:$0xff] (%p53_p3) }
  0x1d   : > { %v452_v2 = vld [vmem:[%s404_s17 + $0x20] sm:$0xff]  ;;  %449 = vst [vmem:[%s400_s18] sm:$0xff] %v448_v0  ;;  %451 = vst [vmem:[%s400_s18 + $0x8] sm:$0xff] %v450_v1  ;;  %v454_v3 = vld [vmem:[%s404_s17 + $0x30] sm:$0xff] }
  0x1e   : > { %453 = vst [vmem:[%s400_s18 + $0x10] sm:$0xff] %v452_v2  ;;  %v456_v4 = vld [vmem:[%s404_s17 + $0x40] sm:$0xff]  ;;  %v458_v5 = vld [vmem:[%s404_s17 + $0x50] sm:$0xff]  ;;  %455 = vst [vmem:[%s400_s18 + $0x18] sm:$0xff] %v454_v3 }
  0x1f   : > { %457 = vst [vmem:[%s400_s18 + $0x20] sm:$0xff] %v456_v4  ;;  %459 = vst [vmem:[%s400_s18 + $0x28] sm:$0xff] %v458_v5  ;;  %v460_v6 = vld [vmem:[%s404_s17 + $0x60] sm:$0xff]  ;;  %v462_v7 = vld [vmem:[%s404_s17 + $0x70] sm:$0xff] }
  0x20   : > { %v464_v8 = vld [vmem:[%s404_s17 + $0x80] sm:$0xff]  ;;  %461 = vst [vmem:[%s400_s18 + $0x30] sm:$0xff] %v460_v6  ;;  %463 = vst [vmem:[%s400_s18 + $0x38] sm:$0xff] %v462_v7 }
  0x21   : > { %465 = vst [vmem:[%s400_s18 + $0x40] sm:$0xff] %v464_v8 }
  0x22 PF: > { %p2540_p7 = scmp.ge.s32.totalorder %s3005_s14, 1  ;;  %p470_p8 = scmp.lt.s32.totalorder %s3005_s14, 5 }
  0x24   : > { %p471_p9 = pnand %p2540_p7, %p470_p8 }
  0x25   : > { %s477_s13 = sand.u32 (!%p471_p9), 1, %s2981_s25   ;;  %v3007_v9 = vmov (!%p471_p9), 0.0   ;;  %v535_v10 = vld [vmem:[%s3593_s2 + $0x8] sm:$0xff] (!%p471_p9)  ;;  %vm3008_vm0 = vmmov (!%p471_p9), 0   ;;  %v1314_v11 = vld [vmem:[%s3597_s6] sm:$0xff] (!%p471_p9)  ;;  %vm553_vm1 = vcmask (!%p471_p9), 64512  }
  0x26   : > { %474 = sbr.rel (%p471_p9) target bundleno = 819 (0x333), region = 106  ;;  %2689 = vmatprep.subr.mxu0 (!%p471_p9), %v3007_v9  ;;  %2867 = vmatprep.subr.mxu1 (!%p471_p9), %v3007_v9  ;;  %v3158_v12 = vld [vmem:[%s3592_s1] sm:$0xff] (!%p471_p9)  ;;  %v3163_v13 = vld [vmem:[%s3592_s1 + $0x10] sm:$0xff] (!%p471_p9)  ;;  %v3009_v14 = vmov (!%p471_p9), 0   ;;  %v3179_v17 = vld [vmem:[%s3592_s1 + $0x8] sm:$0xff] (!%p471_p9)  ;;  %s3612_s23 = sld [smem:[#allocation4_spill]] (!%p471_p9) }
  0x27   : > { %s2889_s27 = smul.u32 (!%p471_p9), 72, %s477_s13  ;;  %2691 = vmatprep.mubr.msk.f32.mxu0 (!%p471_p9), %vm3008_vm0, %v3007_v9  ;;  %2697 = vmatprep.mubr.msk.f32.mxu1 (!%p471_p9), %vm3008_vm0, %v3007_v9  ;;  %v1307_v21 = vld [vmem:[%s3596_s5] sm:$0xff] (!%p471_p9)  ;;  %v2580_v26 = vld [vmem:[%s3596_s5 + $0x8] sm:$0xff] (!%p471_p9)  ;;  %v2584_v29 = vld [vmem:[%s3596_s5 + $0x10] sm:$0xff] (!%p471_p9)  ;;  %s3613_s24 = sld [smem:[#allocation3_spill]] (!%p471_p9) }
  0x28   : > { %2949 = vset.pattern.permute.xlu0 (!%p471_p9), %v3009_v14  ;;  %2950 = vset.pattern.permute.xlu1 (!%p471_p9), %v3009_v14  ;;  %v534_v22 = vld [vmem:[%s3593_s2] sm:$0xff] (!%p471_p9)  ;;  %v2581_v27 = vld [vmem:[%s3597_s6 + $0x8] sm:$0xff] (!%p471_p9)  ;;  %v2585_v30 = vld [vmem:[%s3597_s6 + $0x10] sm:$0xff] (!%p471_p9)  ;;  %s3614_s19 = sld [smem:[#allocation6_spill]] (!%p471_p9) }
  0x29   : > { %s3165_s17 = scalar_lea.vmem (!%p471_p9), [#allocation2], %s2889_s27  ;;  %545 = vperm.xlu0 (!%p471_p9), %2949, %v535_v10   ;;  %1317 = vperm.xlu1 (!%p471_p9), %2950, %v1314_v11   ;;  %v1291_v23 = vld [vmem:[%s3594_s3] sm:$0xff] (!%p471_p9)  ;;  %v2588_v31 = vld [vmem:[%s3596_s5 + $0x18] sm:$0xff] (!%p471_p9)  ;;  %v2596_v37 = vld [vmem:[%s3596_s5 + $0x28] sm:$0xff] (!%p471_p9) }
  0x2a   : > { %v537_v15 = vld [vmem:[%s3165_s17] sm:$0xff] (!%p471_p9)  ;;  %v2546_v16 = vld [vmem:[%s3165_s17 + $0x8] sm:$0xff] (!%p471_p9)  ;;  %v2550_v18 = vld [vmem:[%s3165_s17 + $0x10] sm:$0xff] (!%p471_p9) }
  0x2b   : > { %2690 = vmatpush3.msra.mxu0 (!%p471_p9), %v537_v15  ;;  %2868 = vmatpush3.msra.mxu1 (!%p471_p9), %v537_v15  ;;  %v2554_v19 = vld [vmem:[%s3165_s17 + $0x18] sm:$0xff] (!%p471_p9)  ;;  %v2558_v20 = vld [vmem:[%s3165_s17 + $0x20] sm:$0xff] (!%p471_p9)  ;;  %v2562_v25 = vld [vmem:[%s3165_s17 + $0x28] sm:$0xff] (!%p471_p9) }
  0x2c   : > { %2692 = vmatmul.mubr.msk.f32.vlgmr.msra.gmra.mrb[0].mxu0 (!%p471_p9), %vm553_vm1, %v3158_v12  ;;  %2698 = vmatmul.mubr.msk.f32.vlgmr.msra.gmra.mrb[0].mxu1 (!%p471_p9), %vm553_vm1, %v3163_v13  ;;  %v1298_v24 = vld [vmem:[%s3595_s4] sm:$0xff] (!%p471_p9)  ;;  %v2566_v28 = vld [vmem:[%s3165_s17 + $0x30] sm:$0xff] (!%p471_p9)  ;;  %v2597_v38 = vld [vmem:[%s3597_s6 + $0x28] sm:$0xff] (!%p471_p9)  ;;  %p523_p10 = scmp.lt.s32.totalorder (!%p471_p9), %s3612_s23, 1 }
  0x2d   : > { %2700 = vmatprep.subr.mxu1 %v3007_v9  ;;  %2694 = vmatprep.mubr.msk.f32.mxu0 %vm3008_vm0, %v3007_v9  ;;  %v2589_v32 = vld [vmem:[%s3597_s6 + $0x18] sm:$0xff]  ;;  %v2592_v34 = vld [vmem:[%s3596_s5 + $0x20] sm:$0xff]  ;;  %v2600_v39 = vld [vmem:[%s3596_s5 + $0x30] sm:$0xff]  ;;  %p525_p11 = scmp.lt.s32.totalorder %s3613_s24, 1 }
  0x2e   : > { %2701 = vmatpush3.msra.mxu1 %v2546_v16  ;;  %2702 = vmatprep.mubr.msk.f32.mxu1 %vm3008_vm0, %v3007_v9  ;;  %v2570_v33 = vld [vmem:[%s3165_s17 + $0x38] sm:$0xff]  ;;  %v2574_v36 = vld [vmem:[%s3165_s17 + $0x40] sm:$0xff]  ;;  %v2601_v40 = vld [vmem:[%s3597_s6 + $0x30] sm:$0xff]  ;;  %s3629_s23 = smov (!%p523_p10, %s3612_s23), 1 }
  0x2f   : > { %2711 = vmatprep.subr.mxu0 %v3007_v9  ;;  %2722 = vmatprep.subr.mxu1 %v3007_v9  ;;  %v2593_v35 = vld [vmem:[%s3597_s6 + $0x20] sm:$0xff]  ;;  %v2604_v41 = vld [vmem:[%s3596_s5 + $0x38] sm:$0xff]  ;;  %v536_v47 = vld [vmem:[%s3593_s2 + $0x10] sm:$0xff]  ;;  %s3631_s24 = smov (!%p525_p11, %s3613_s24), 1  ;;  %s2541_s18 = sshll.u32 %s3629_s23, 1 }
  0x30   : > { %2695 = vmatmul.mubr.msk.f32.gmra.mrb[2].mxu0 %vm553_vm1, %v3179_v17  ;;  %2703 = vmatmul.mubr.msk.f32.vlgmr.msra.gmra.mrb[2].mxu1 %vm553_vm1, %v3158_v12  ;;  %v2605_v42 = vld [vmem:[%s3597_s6 + $0x38] sm:$0xff]  ;;  %v2608_v43 = vld [vmem:[%s3596_s5 + $0x40] sm:$0xff]  ;;  %v2238_v49 = vld [vmem:[%s3603_s12 + $0x8] sm:$0xff]  ;;  %s528_s13 = sadd.s32 %s2541_s18, %s3631_s24 }
  0x31   : > { %2705 = vmatprep.mubr.msk.f32.mxu1 %vm3008_vm0, %v3007_v9  ;;  %2712 = vmatpush3.msra.mxu0 %v2550_v18  ;;  %v2609_v44 = vld [vmem:[%s3597_s6 + $0x40] sm:$0xff]  ;;  %v2239_v50 = vld [vmem:[%s3603_s12 + $0x10] sm:$0xff]  ;;  %v2240_v51 = vld [vmem:[%s3603_s12 + $0x18] sm:$0xff]  ;;  %s2542_s27 = sshll.u32 %s528_s13, 3 }
  0x32   : > { %2713 = vmatprep.mubr.msk.f32.mxu0 %vm3008_vm0, %v3007_v9  ;;  %2723 = vmatpush3.msra.mxu1 %v2554_v19  ;;  %v2213_v45 = vld [vmem:[%s3600_s9] sm:$0xff]  ;;  %v2242_v53 = vld [vmem:[%s3603_s12 + $0x28] sm:$0xff]  ;;  %v2243_v54 = vld [vmem:[%s3603_s12 + $0x30] sm:$0xff]  ;;  %s530_s20 = scalar_lea.vmem %s3614_s19, %s2542_s27 }
  0x33   : > { %2733 = vmatprep.subr.mxu0 %v3007_v9  ;;  %2744 = vmatprep.subr.mxu1 %v3007_v9  ;;  %v2220_v46 = vld [vmem:[%s3601_s10] sm:$0xff]  ;;  %v2244_v55 = vld [vmem:[%s3603_s12 + $0x38] sm:$0xff] }
  0x34   : > { %2706 = vmatmul.mubr.msk.f32.gmra.mrb[4].mxu1 %vm553_vm1, %v3179_v17  ;;  %2714 = vmatmul.mubr.msk.f32.vlgmr.msra.gmra.mrb[4].mxu0 %vm553_vm1, %v3158_v12  ;;  %v2237_v48 = vld [vmem:[%s3603_s12] sm:$0xff] }
  0x35   : > { %2708 = vmatprep.mubr.msk.f32.mxu1 %vm3008_vm0, %v3007_v9  ;;  %2716 = vmatprep.mubr.msk.f32.mxu0 %vm3008_vm0, %v3007_v9  ;;  %v2241_v52 = vld [vmem:[%s3603_s12 + $0x20] sm:$0xff] }
  0x36   : > { %2734 = vmatpush3.msra.mxu0 %v2558_v20  ;;  %1310 = vperm.xlu0 %2949, %v1307_v21   ;;  %v2245_v56 = vld [vmem:[%s3603_s12 + $0x40] sm:$0xff] }
  0x37   : > { %2755 = vmatprep.subr.mxu0 %v3007_v9  ;;  %540 = vperm.xlu1 %2950, %v534_v22   ;;  %v1322_v15 = vld [vmem:[%s3599_s8] sm:$0xff] }
  0x38   : > { %2709 = vmatmul.mubr.msk.f32.gmra.mrb[6].mxu1 %vm553_vm1, %v3163_v13  ;;  %2717 = vmatmul.mubr.msk.f32.gmra.mrb[6].mxu0 %vm553_vm1, %v3179_v17 }
  0x39   : > { %2719 = vmatprep.mubr.msk.f32.mxu0 %vm3008_vm0, %v3007_v9  ;;  %2724 = vmatprep.mubr.msk.f32.mxu1 %vm3008_vm0, %v3007_v9 }
  0x3a   : > { %1294 = vperm.xlu0 %2949, %v1291_v23  }
  0x3b   : > { %1301 = vperm.xlu1 %2950, %v1298_v24  }
  0x3c   : > { %2720 = vmatmul.mubr.msk.f32.gmra.mrb[8].mxu0 %vm553_vm1, %v3163_v13  ;;  %2725 = vmatmul.mubr.msk.f32.vlgmr.msra.gmra.mrb[8].mxu1 %vm553_vm1, %v3158_v12 }
  0x3d   : > { %2727 = vmatprep.mubr.msk.f32.mxu1 %vm3008_vm0, %v3007_v9  ;;  %2735 = vmatprep.mubr.msk.f32.mxu0 %vm3008_vm0, %v3007_v9 }
  0x3e   : > { %2745 = vmatpush3.msra.mxu1 %v2562_v25  ;;  %1473 = vperm.xlu0 %2949, %v2580_v26  }
  0x3f   : > { %2766 = vmatprep.subr.mxu1 %v3007_v9  ;;  %1481 = vperm.xlu1 %2950, %v2581_v27  }
  0x40   : > { %2728 = vmatmul.mubr.msk.f32.gmra.mrb[10].mxu1 %vm553_vm1, %v3179_v17  ;;  %2736 = vmatmul.mubr.msk.f32.vlgmr.msra.gmra.mrb[10].mxu0 %vm553_vm1, %v3158_v12 }
  0x41   : > { %2730 = vmatprep.mubr.msk.f32.mxu1 %vm3008_vm0, %v3007_v9  ;;  %2738 = vmatprep.mubr.msk.f32.mxu0 %vm3008_vm0, %v3007_v9 }
  0x42   : > { %2756 = vmatpush3.msra.mxu0 %v2566_v28  ;;  %1566 = vperm.xlu0 %2949, %v2584_v29  }
  0x43   : > { %2777 = vmatprep.subr.mxu0 %v3007_v9  ;;  %1574 = vperm.xlu1 %2950, %v2585_v30  }
  0x44   : > { %2731 = vmatmul.mubr.msk.f32.gmra.mrb[12].mxu1 %vm553_vm1, %v3163_v13  ;;  %2739 = vmatmul.mubr.msk.f32.gmra.mrb[12].mxu0 %vm553_vm1, %v3179_v17 }
  0x45   : > { %2741 = vmatprep.mubr.msk.f32.mxu0 %vm3008_vm0, %v3007_v9  ;;  %2746 = vmatprep.mubr.msk.f32.mxu1 %vm3008_vm0, %v3007_v9 }
  0x46   : > { %1659 = vperm.xlu0 %2949, %v2588_v31  }
  0x47   : > { %1667 = vperm.xlu1 %2950, %v2589_v32  }
  0x48   : > { %2742 = vmatmul.mubr.msk.f32.gmra.mrb[14].mxu0 %vm553_vm1, %v3163_v13  ;;  %2747 = vmatmul.mubr.msk.f32.vlgmr.msra.gmra.mrb[14].mxu1 %vm553_vm1, %v3158_v12 }
  0x49   : > { %2749 = vmatprep.mubr.msk.f32.mxu1 %vm3008_vm0, %v3007_v9  ;;  %2757 = vmatprep.mubr.msk.f32.mxu0 %vm3008_vm0, %v3007_v9 }
  0x4a   : > { %2767 = vmatpush3.msra.mxu1 %v2570_v33  ;;  %1752 = vperm.xlu0 %2949, %v2592_v34  }
  0x4b   : > { %1760 = vperm.xlu1 %2950, %v2593_v35   ;;  %2788 = vmatprep.subr.mxu1 %v3007_v9 }
  0x4c   : > { %2750 = vmatmul.mubr.msk.f32.gmra.mrb[16].mxu1 %vm553_vm1, %v3179_v17  ;;  %2758 = vmatmul.mubr.msk.f32.vlgmr.msra.gmra.mrb[16].mxu0 %vm553_vm1, %v3158_v12 }
  0x4d   : > { %2752 = vmatprep.mubr.msk.f32.mxu1 %vm3008_vm0, %v3007_v9  ;;  %2760 = vmatprep.mubr.msk.f32.mxu0 %vm3008_vm0, %v3007_v9 }
  0x4e   : > { %2778 = vmatpush3.msra.mxu0 %v2574_v36  ;;  %1845 = vperm.xlu0 %2949, %v2596_v37  }
  0x4f   : > { %1853 = vperm.xlu1 %2950, %v2597_v38   ;;  %2838 = vmatprep.subr.mxu0 %v3007_v9 }
  0x50   : > { %2753 = vmatmul.mubr.msk.f32.gmra.mrb[18].mxu1 %vm553_vm1, %v3163_v13  ;;  %2761 = vmatmul.mubr.msk.f32.gmra.mrb[18].mxu0 %vm553_vm1, %v3179_v17 }
  0x51   : > { %2763 = vmatprep.mubr.msk.f32.mxu0 %vm3008_vm0, %v3007_v9  ;;  %2768 = vmatprep.mubr.msk.f32.mxu1 %vm3008_vm0, %v3007_v9 }
  0x52   : > { %1938 = vperm.xlu0 %2949, %v2600_v39  }
  0x53   : > { %1946 = vperm.xlu1 %2950, %v2601_v40  }
  0x54   : > { %2764 = vmatmul.mubr.msk.f32.gmra.mrb[20].mxu0 %vm553_vm1, %v3163_v13  ;;  %2769 = vmatmul.mubr.msk.f32.vlgmr.msra.gmra.mrb[20].mxu1 %vm553_vm1, %v3158_v12 }
  0x55   : > { %2771 = vmatprep.mubr.msk.f32.mxu1 %vm3008_vm0, %v3007_v9  ;;  %2779 = vmatprep.mubr.msk.f32.mxu0 %vm3008_vm0, %v3007_v9 }
  0x56   : > { %2031 = vperm.xlu0 %2949, %v2604_v41  }
  0x57   : > { %2039 = vperm.xlu1 %2950, %v2605_v42  }
  0x58   : > { %2772 = vmatmul.mubr.msk.f32.gmra.mrb[22].mxu1 %vm553_vm1, %v3179_v17  ;;  %2780 = vmatmul.mubr.msk.f32.vlgmr.msra.gmra.mrb[22].mxu0 %vm553_vm1, %v3158_v12 }
  0x59   : > { %2774 = vmatprep.mubr.msk.f32.mxu1 %vm3008_vm0, %v3007_v9  ;;  %2782 = vmatprep.mubr.msk.f32.mxu0 %vm3008_vm0, %v3007_v9 }
  0x5a   : > { %2124 = vperm.xlu0 %2949, %v2608_v43  }
  0x5b   : > { %2132 = vperm.xlu1 %2950, %v2609_v44   ;;  %v1306_v44 = vld [vmem:[%s3598_s7] sm:$0xff] }
  0x5c   : > { %2775 = vmatmul.mubr.msk.f32.gmra.mrb[24].mxu1 %vm553_vm1, %v3163_v13  ;;  %2783 = vmatmul.mubr.msk.f32.gmra.mrb[24].mxu0 %vm553_vm1, %v3179_v17 }
  0x5d   : > { %2785 = vmatprep.mubr.msk.f32.mxu0 %vm3008_vm0, %v3007_v9  ;;  %2790 = vmatprep.mubr.msk.f32.mxu1 %vm3008_vm0, %v3007_v9 }
  0x5e   : > { %2216 = vperm.xlu0 %2949, %v2213_v45  }
  0x5f   : > { %2223 = vperm.xlu1 %2950, %v2220_v46  }
  0x60   : > { %2786 = vmatmul.mubr.msk.f32.gmra.mrb[26].mxu0 %vm553_vm1, %v3163_v13 }
  0x61   : > { %2840 = vmatprep.mubr.msk.f32.mxu0 %vm3008_vm0, %v3007_v9 }
  0x62   : > { %550 = vperm.xlu0 %2949, %v536_v47  }
  0x63   : > { %2248 = vperm.xlu1 %2950, %v2237_v48  }
  0x66   : > { %2253 = vperm.xlu0 %2949, %v2238_v49  }
  0x67   : > { %2258 = vperm.xlu1 %2950, %v2239_v50  }
  0x6a   : > { %2263 = vperm.xlu0 %2949, %v2240_v51  }
  0x6b   : > { %2268 = vperm.xlu1 %2950, %v2241_v52  }
  0x6e   : > { %2273 = vperm.xlu0 %2949, %v2242_v53  }
  0x6f   : > { %2278 = vperm.xlu1 %2950, %v2243_v54  }
  0x72   : > { %2283 = vperm.xlu0 %2949, %v2244_v55  }
  0x73   : > { %2288 = vperm.xlu1 %2950, %v2245_v56  }
  0xa8   : > { %v3395_v57 = vpop.permute.xlu0 %545  ;;  %v1318_v58 = vpop.permute.xlu1 %1317 }
  0xb5   : > { %v1311_v63 = vpop.permute.xlu0 %1310 }
  0xb6   : > { %v541_v5 = vpop.permute.xlu1 %540 }
  0xb9   : > { %v1295_v13 = vpop.permute.xlu0 %1294 }
  0xba   : > { %v1302_v20 = vpop.permute.xlu1 %1301 }
  0xbd   : > { %v1474_v26 = vpop.permute.xlu0 %1473 }
  0xbe   : > { %v1482_v33 = vpop.permute.xlu1 %1481 }
  0xc1   : > { %v1567_v42 = vpop.permute.xlu0 %1566 }
  0xc2   : > { %v1575_v51 = vpop.permute.xlu1 %1574 }
  0xff   : > { %v629_v59 = vpop.f32.mrb[0].mxu0  ;;  %v3397_v60 = vpop.f32.mrb[0].mxu1 }
 0x100   : > { %v2693_v61 = vpop.f32.mrb[1].mxu0  ;;  %v2699_v62 = vpop.f32.mrb[1].mxu1 }
 0x101   : > { %v1660_v59 = vpop.permute.xlu0 %1659  ;;  %v2582_v61 = vld [vmem:[%s3599_s8 + $0x8] sm:$0xff] }
 0x103   : > { %v633_v0 = vpop.f32.mrb[2].mxu0  ;;  %v710_v1 = vpop.f32.mrb[2].mxu1 }
 0x104   : > { %v634_v2 = vadd.f32 %v633_v0, %v3395_v57  ;;  %v2696_v3 = vpop.f32.mrb[3].mxu0  ;;  %v2704_v4 = vpop.f32.mrb[3].mxu1 }
 0x105   : > { %v1668_v4 = vpop.permute.xlu1 %1667 }
 0x106   : > { %v1313_v6 = vmul.f32 %v1311_v63, %v634_v2 }
 0x107   : > { %v714_v7 = vpop.f32.mrb[4].mxu1  ;;  %v791_v8 = vpop.f32.mrb[4].mxu0 }
 0x108   : > { %v1320_v10 = vadd.f32 %v1318_v58, %v1313_v6  ;;  %v2715_v11 = vpop.f32.mrb[5].mxu0  ;;  %v2707_v12 = vpop.f32.mrb[5].mxu1  ;;  %v715_v23 = vadd.f32 %v714_v7, %v3395_v57 }
 0x109   : > { %v1753_v12 = vpop.permute.xlu0 %1752 }
 0x10a   : > { %v1321_v14 = vmax.f32 %v1320_v10, 0.0  ;;  %v1476_v29 = vmul.f32 %v1474_v26, %v715_v23 }
 0x10b   : > { %v3403_v16 = vpop.f32.mrb[6].mxu1  ;;  %v795_v17 = vpop.f32.mrb[6].mxu0 }
 0x10c   : > { %v2718_v18 = vpop.f32.mrb[7].mxu0  ;;  %2789 = vmatpush3.msra.mxu1 %v1321_v14  ;;  %v2710_v19 = vpop.f32.mrb[7].mxu1  ;;  %v1484_v37 = vadd.f32 %v1482_v33, %v1476_v29  ;;  %v796_v38 = vadd.f32 %v795_v17, %v3395_v57  ;;  %v2590_v29 = vld [vmem:[%s3599_s8 + $0x18] sm:$0xff] }
 0x10d   : > { %2791 = vmatmul.mubr.msk.f32.vlgmr.msra.gmra.mrb[26].mxu1 %vm553_vm1, %v1322_v15  ;;  %2793 = vmatprep.subr.mxu1 %v3007_v9 }
 0x10e   : > { %2795 = vmatprep.mubr.msk.f32.mxu1 %vm3008_vm0, %v3007_v9  ;;  %v1485_v47 = vmax.f32 %v1484_v37, 0.0  ;;  %v1569_v48 = vmul.f32 %v1567_v42, %v796_v38 }
 0x10f   : > { %v3409_v21 = vpop.f32.mrb[8].mxu0  ;;  %v872_v22 = vpop.f32.mrb[8].mxu1 }
 0x110   : > { %v2721_v24 = vpop.f32.mrb[9].mxu0  ;;  %v2726_v25 = vpop.f32.mrb[9].mxu1  ;;  %v1577_v54 = vadd.f32 %v1575_v51, %v1569_v48 }
 0x111   : > { %v1761_v22 = vpop.permute.xlu1 %1760 }
 0x112   : > { %v1578_v0 = vmax.f32 %v1577_v54, 0.0  ;;  %v2602_v54 = vld [vmem:[%s3599_s8 + $0x30] sm:$0xff] }
 0x113   : > { %v876_v27 = vpop.f32.mrb[10].mxu1  ;;  %v953_v28 = vpop.f32.mrb[10].mxu0 }
 0x114   : > { %v954_v30 = vadd.f32 %v953_v28, %v541_v5  ;;  %v2737_v31 = vpop.f32.mrb[11].mxu0  ;;  %v2729_v32 = vpop.f32.mrb[11].mxu1  ;;  %v877_v55 = vadd.f32 %v876_v27, %v3395_v57 }
 0x116   : > { %v1297_v34 = vmul.f32 %v1295_v13, %v954_v30  ;;  %v1662_v1 = vmul.f32 %v1660_v59, %v877_v55  ;;  %v2586_v13 = vld [vmem:[%s3599_s8 + $0x10] sm:$0xff]  ;;  %v1846_v30 = vpop.permute.xlu0 %1845 }
 0x117   : > { %v3412_v35 = vpop.f32.mrb[12].mxu1  ;;  %v958_v36 = vpop.f32.mrb[12].mxu0 }
 0x118   : > { %v1304_v39 = vadd.f32 %v1302_v20, %v1297_v34  ;;  %v2740_v40 = vpop.f32.mrb[13].mxu0  ;;  %v2732_v41 = vpop.f32.mrb[13].mxu1  ;;  %v1670_v7 = vadd.f32 %v1668_v4, %v1662_v1  ;;  %v959_v8 = vadd.f32 %v958_v36, %v3395_v57 }
 0x119   : > { %v1854_v36 = vpop.permute.xlu1 %1853 }
 0x11a   : > { %v1305_v43 = vmax.f32 %v1304_v39, 0.0  ;;  %v1671_v17 = vmax.f32 %v1670_v7, 0.0  ;;  %v1755_v18 = vmul.f32 %v1753_v12, %v959_v8  ;;  %v2594_v39 = vld [vmem:[%s3599_s8 + $0x20] sm:$0xff]  ;;  %v1939_v40 = vpop.permute.xlu0 %1938  ;;  %v2230_v12 = vld [vmem:[%s3602_s11 + $0x10] sm:$0xff] }
 0x11b   : > { %v3418_v45 = vpop.f32.mrb[14].mxu0  ;;  %v1035_v46 = vpop.f32.mrb[14].mxu1 }
 0x11c   : > { %2794 = vmatpush3.msra.mxu1 %v1305_v43  ;;  %v2748_v49 = vpop.f32.mrb[15].mxu1  ;;  %v2743_v50 = vpop.f32.mrb[15].mxu0  ;;  %v1763_v25 = vadd.f32 %v1761_v22, %v1755_v18  ;;  %v2235_v18 = vld [vmem:[%s3602_s11 + $0x38] sm:$0xff] }
 0x11d   : > { %2796 = vmatmul.mubr.msk.f32.vlgmr.msra.gmra.mrb[26].mxu1 %vm553_vm1, %v1306_v44  ;;  %2798 = vmatprep.subr.mxu1 %v3007_v9  ;;  %v1947_v43 = vpop.permute.xlu1 %1946 }
 0x11e   : > { %2799 = vmatpush3.msra.mxu1 %v1485_v47  ;;  %2800 = vmatprep.mubr.msk.f32.mxu1 %vm3008_vm0, %v3007_v9  ;;  %v1764_v32 = vmax.f32 %v1763_v25, 0.0  ;;  %v2598_v47 = vld [vmem:[%s3599_s8 + $0x28] sm:$0xff]  ;;  %v2032_v48 = vpop.permute.xlu0 %2031 }
 0x11f   : > { %v1039_v52 = vpop.f32.mrb[16].mxu1  ;;  %v1116_v53 = vpop.f32.mrb[16].mxu0  ;;  %2803 = vmatprep.subr.mxu1 %v3007_v9 }
 0x120   : > { %v2751_v56 = vpop.f32.mrb[17].mxu1  ;;  %v2759_v58 = vpop.f32.mrb[17].mxu0  ;;  %v1040_v26 = vadd.f32 %v1039_v52, %v3395_v57 }
 0x121   : > { %v2040_v51 = vpop.permute.xlu1 %2039 }
 0x122   : > { %v1848_v33 = vmul.f32 %v1846_v30, %v1040_v26  ;;  %v2125_v55 = vpop.permute.xlu0 %2124 }
 0x123   : > { %v3429_v62 = vpop.f32.mrb[18].mxu1  ;;  %v1120_v63 = vpop.f32.mrb[18].mxu0 }
 0x124   : > { %v2762_v2 = vpop.f32.mrb[19].mxu0  ;;  %v2754_v3 = vpop.f32.mrb[19].mxu1  ;;  %v1856_v37 = vadd.f32 %v1854_v36, %v1848_v33  ;;  %v1121_v38 = vadd.f32 %v1120_v63, %v3395_v57 }
 0x125   : > { %2801 = vmatmul.mubr.msk.f32.vlgmr.msra.gmra.mrb[26].mxu1 %vm553_vm1, %v2582_v61  ;;  %v2133_v59 = vpop.permute.xlu1 %2132 }
 0x126   : > { %2804 = vmatpush3.msra.mxu1 %v1578_v0  ;;  %2805 = vmatprep.mubr.msk.f32.mxu1 %vm3008_vm0, %v3007_v9  ;;  %v1857_v41 = vmax.f32 %v1856_v37, 0.0  ;;  %v1941_v42 = vmul.f32 %v1939_v40, %v1121_v38  ;;  %v2610_v0 = vld [vmem:[%s3599_s8 + $0x40] sm:$0xff]  ;;  %v2217_v1 = vpop.permute.xlu0 %2216 }
 0x127   : > { %v3434_v5 = vpop.f32.mrb[20].mxu0  ;;  %v1197_v6 = vpop.f32.mrb[20].mxu1  ;;  %2808 = vmatprep.subr.mxu1 %v3007_v9 }
 0x128   : > { %v2770_v10 = vpop.f32.mrb[21].mxu1  ;;  %v2765_v11 = vpop.f32.mrb[21].mxu0  ;;  %v1949_v44 = vadd.f32 %v1947_v43, %v1941_v42 }
 0x129   : > { %v2224_v6 = vpop.permute.xlu1 %2223  ;;  %v2228_v10 = vld [vmem:[%s3602_s11] sm:$0xff]  ;;  %v2229_v11 = vld [vmem:[%s3602_s11 + $0x8] sm:$0xff] }
 0x12a   : > { %v1950_v49 = vmax.f32 %v1949_v44, 0.0 }
 0x12b   : > { %v1201_v14 = vpop.f32.mrb[22].mxu1  ;;  %v1278_v15 = vpop.f32.mrb[22].mxu0 }
 0x12c   : > { %v2773_v19 = vpop.f32.mrb[23].mxu1  ;;  %v2781_v20 = vpop.f32.mrb[23].mxu0  ;;  %v1202_v46 = vadd.f32 %v1201_v14, %v3395_v57  ;;  %v2232_v14 = vld [vmem:[%s3602_s11 + $0x20] sm:$0xff]  ;;  %v2233_v15 = vld [vmem:[%s3602_s11 + $0x28] sm:$0xff] }
 0x12d   : > { %2806 = vmatmul.mubr.msk.f32.vlgmr.msra.gmra.mrb[26].mxu1 %vm553_vm1, %v2586_v13  ;;  %v2231_v13 = vld [vmem:[%s3602_s11 + $0x18] sm:$0xff]  ;;  %v2236_v19 = vld [vmem:[%s3602_s11 + $0x40] sm:$0xff]  ;;  %v3543_v20 = vpop.permute.xlu0 %550  ;;  %v2249_v22 = vpop.permute.xlu1 %2248 }
 0x12e   : > { %2809 = vmatpush3.msra.mxu1 %v1671_v17  ;;  %2810 = vmatprep.mubr.msk.f32.mxu1 %vm3008_vm0, %v3007_v9  ;;  %v2034_v50 = vmul.f32 %v2032_v48, %v1202_v46  ;;  %v2234_v17 = vld [vmem:[%s3602_s11 + $0x30] sm:$0xff]  ;;  %v639_v25 = vadd.f32 %v3397_v60, %v3543_v20  ;;  %v801_v38 = vadd.f32 %v3409_v21, %v3543_v20 }
 0x12f   : > { %v3444_v23 = vpop.f32.mrb[24].mxu1  ;;  %v1282_v24 = vpop.f32.mrb[24].mxu0  ;;  %2813 = vmatprep.subr.mxu1 %v3007_v9  ;;  %v882_v44 = vadd.f32 %v3412_v35, %v3543_v20  ;;  %v964_v21 = vadd.f32 %v3418_v45, %v3543_v20  ;;  %v1045_v35 = vadd.f32 %v3429_v62, %v3543_v20  ;;  %v1126_v45 = vadd.f32 %v3434_v5, %v3543_v20 }
 0x130   : > { %v2784_v27 = vpop.f32.mrb[25].mxu0  ;;  %v2776_v28 = vpop.f32.mrb[25].mxu1  ;;  %v2042_v52 = vadd.f32 %v2040_v51, %v2034_v50  ;;  %v1283_v53 = vadd.f32 %v1282_v24, %v3395_v57  ;;  %v2606_v57 = vld [vmem:[%s3599_s8 + $0x38] sm:$0xff]  ;;  %v1207_v62 = vadd.f32 %v3444_v23, %v3543_v20 }
 0x131   : > { %v2259_v36 = vpop.permute.xlu1 %2258 }
 0x132   : > { %v2043_v56 = vmax.f32 %v2042_v52, 0.0  ;;  %v2127_v58 = vmul.f32 %v2125_v55, %v1283_v53 }
 0x133   : > { %v3451_v31 = vpop.f32.mrb[26].mxu0 }
 0x134   : > { %v2787_v34 = vpop.f32.mrb[27].mxu0  ;;  %v2135_v61 = vadd.f32 %v2133_v59, %v2127_v58  ;;  %v1288_v5 = vadd.f32 %v3451_v31, %v3543_v20 }
 0x135   : > { %2811 = vmatmul.mubr.msk.f32.vlgmr.msra.gmra.mrb[26].mxu1 %vm553_vm1, %v2590_v29  ;;  %v2254_v29 = vpop.permute.xlu0 %2253 }
 0x136   : > { %2814 = vmatpush3.msra.mxu1 %v1764_v32  ;;  %2815 = vmatprep.mubr.msk.f32.mxu1 %vm3008_vm0, %v3007_v9  ;;  %v2136_v63 = vmax.f32 %v2135_v61, 0.0 }
 0x137   : > { %2818 = vmatprep.subr.mxu1 %v3007_v9 }
 0x139   : > { %v2264_v42 = vpop.permute.xlu0 %2263 }
 0x13d   : > { %2816 = vmatmul.mubr.msk.f32.vlgmr.msra.gmra.mrb[26].mxu1 %vm553_vm1, %v2594_v39  ;;  %v2274_v55 = vpop.permute.xlu0 %2273 }
 0x13e   : > { %2819 = vmatpush3.msra.mxu1 %v1857_v41  ;;  %2820 = vmatprep.mubr.msk.f32.mxu1 %vm3008_vm0, %v3007_v9 }
 0x13f   : > { %2823 = vmatprep.subr.mxu1 %v3007_v9 }
 0x145   : > { %2821 = vmatmul.mubr.msk.f32.vlgmr.msra.gmra.mrb[26].mxu1 %vm553_vm1, %v2598_v47 }
 0x146   : > { %2824 = vmatpush3.msra.mxu1 %v1950_v49  ;;  %2825 = vmatprep.mubr.msk.f32.mxu1 %vm3008_vm0, %v3007_v9  ;;  %v2269_v49 = vpop.permute.xlu1 %2268 }
 0x147   : > { %2828 = vmatprep.subr.mxu1 %v3007_v9 }
 0x14d   : > { %2826 = vmatmul.mubr.msk.f32.vlgmr.msra.gmra.mrb[26].mxu1 %vm553_vm1, %v2602_v54 }
 0x14e   : > { %2829 = vmatpush3.msra.mxu1 %v2043_v56  ;;  %2830 = vmatprep.mubr.msk.f32.mxu1 %vm3008_vm0, %v3007_v9 }
 0x14f   : > { %2833 = vmatprep.subr.mxu1 %v3007_v9 }
 0x155   : > { %2831 = vmatmul.mubr.msk.f32.vlgmr.msra.gmra.mrb[26].mxu1 %vm553_vm1, %v2606_v57 }
 0x156   : > { %2834 = vmatpush3.msra.mxu1 %v2136_v63  ;;  %2835 = vmatprep.mubr.msk.f32.mxu1 %vm3008_vm0, %v3007_v9  ;;  %v2279_v63 = vpop.permute.xlu1 %2278 }
 0x15d   : > { %2836 = vmatmul.mubr.msk.f32.vlgmr.msra.gmra.mrb[26].mxu1 %vm553_vm1, %v2610_v0 }
 0x230   : > { %v2208_v2 = vpop.f32.mrb[26].mxu1 }
 0x231   : > { %v2219_v3 = vmul.f32 %v2217_v1, %v2208_v2  ;;  %v2837_v4 = vpop.f32.mrb[27].mxu1 }
 0x233   : > { %v2226_v7 = vadd.f32 %v2224_v6, %v2219_v3  ;;  %v2284_v6 = vpop.permute.xlu0 %2283 }
 0x235   : > { %v2227_v8 = vmax.f32 %v2226_v7, 0.0 }
 0x237   : > { %2839 = vmatpush3.msra.mxu0 %v2227_v8 }
 0x238   : > { %2841 = vmatmul.mubr.msk.f32.vlgmr.msra.gmra.mrb[28].mxu0 %vm553_vm1, %v2228_v10 }
 0x239   : > { %2843 = vmatprep.mubr.msk.f32.mxu0 %vm3008_vm0, %v3007_v9 }
 0x23c   : > { %2844 = vmatmul.mubr.msk.f32.gmra.mrb[30].mxu0 %vm553_vm1, %v2229_v11 }
 0x23d   : > { %2846 = vmatprep.mubr.msk.f32.mxu0 %vm3008_vm0, %v3007_v9 }
 0x240   : > { %2847 = vmatmul.mubr.msk.f32.gmra.mrb[32].mxu0 %vm553_vm1, %v2230_v12 }
 0x241   : > { %2849 = vmatprep.mubr.msk.f32.mxu0 %vm3008_vm0, %v3007_v9 }
 0x244   : > { %2850 = vmatmul.mubr.msk.f32.gmra.mrb[34].mxu0 %vm553_vm1, %v2231_v13  ;;  %v2289_v13 = vpop.permute.xlu1 %2288 }
 0x245   : > { %2852 = vmatprep.mubr.msk.f32.mxu0 %vm3008_vm0, %v3007_v9 }
 0x248   : > { %2853 = vmatmul.mubr.msk.f32.gmra.mrb[36].mxu0 %vm553_vm1, %v2232_v14 }
 0x249   : > { %2855 = vmatprep.mubr.msk.f32.mxu0 %vm3008_vm0, %v3007_v9 }
 0x24c   : > { %2856 = vmatmul.mubr.msk.f32.gmra.mrb[38].mxu0 %vm553_vm1, %v2233_v15 }
 0x24d   : > { %2858 = vmatprep.mubr.msk.f32.mxu0 %vm3008_vm0, %v3007_v9 }
 0x250   : > { %2859 = vmatmul.mubr.msk.f32.gmra.mrb[40].mxu0 %vm553_vm1, %v2234_v17 }
 0x251   : > { %2861 = vmatprep.mubr.msk.f32.mxu0 %vm3008_vm0, %v3007_v9 }
 0x254   : > { %2862 = vmatmul.mubr.msk.f32.gmra.mrb[42].mxu0 %vm553_vm1, %v2235_v18 }
 0x255   : > { %2864 = vmatprep.mubr.msk.f32.mxu0 %vm3008_vm0, %v3007_v9  ;;  %v720_v9 = vadd.f32 %v3403_v16, %v3543_v20 }
 0x258   : > { %2865 = vmatmul.mubr.msk.f32.gmra.mrb[44].mxu0 %vm553_vm1, %v2236_v19 }
 0x30b   : > { %v2384_v24 = vpop.f32.mrb[28].mxu0 }
 0x30c   : > { %v2385_v26 = vadd.f32 %v2384_v24, %v2249_v22  ;;  %v2842_v27 = vpop.f32.mrb[29].mxu0 }
 0x30e   : > { %v2428_v28 = vmul.f32 %v2385_v26, %v639_v25 }
 0x30f   : > { %v2389_v30 = vpop.f32.mrb[30].mxu0 }
 0x310   : > { %v2390_v32 = vadd.f32 %v2389_v30, %v2254_v29  ;;  %v2845_v33 = vpop.f32.mrb[31].mxu0 }
 0x312   : > { %v2430_v34 = vmul.f32 %v2390_v32, %v720_v9 }
 0x313   : > { %v2394_v37 = vpop.f32.mrb[32].mxu0 }
 0x314   : > { %v2431_v39 = vadd.f32 %v2430_v34, %v2428_v28  ;;  %v2395_v40 = vadd.f32 %v2394_v37, %v2259_v36  ;;  %v2848_v41 = vpop.f32.mrb[33].mxu0 }
 0x316   : > { %v2432_v60 = vmul.f32 %v2395_v40, %v801_v38 }
 0x317   : > { %v2399_v43 = vpop.f32.mrb[34].mxu0 }
 0x318   : > { %v2433_v46 = vadd.f32 %v2432_v60, %v2431_v39  ;;  %v2400_v16 = vadd.f32 %v2399_v43, %v2264_v42  ;;  %v2851_v47 = vpop.f32.mrb[35].mxu0 }
 0x31a   : > { %v2434_v48 = vmul.f32 %v2400_v16, %v882_v44 }
 0x31b   : > { %v2404_v50 = vpop.f32.mrb[36].mxu0 }
 0x31c   : > { %v2435_v51 = vadd.f32 %v2434_v48, %v2433_v46  ;;  %v2405_v52 = vadd.f32 %v2404_v50, %v2269_v49  ;;  %v2854_v53 = vpop.f32.mrb[37].mxu0 }
 0x31e   : > { %v2436_v54 = vmul.f32 %v2405_v52, %v964_v21 }
 0x31f   : > { %v2409_v56 = vpop.f32.mrb[38].mxu0 }
 0x320   : > { %v2437_v58 = vadd.f32 %v2436_v54, %v2435_v51  ;;  %v2410_v59 = vadd.f32 %v2409_v56, %v2274_v55  ;;  %v2857_v61 = vpop.f32.mrb[39].mxu0 }
 0x322   : > { %v2438_v57 = vmul.f32 %v2410_v59, %v1045_v35 }
 0x323   : > { %v2414_v0 = vpop.f32.mrb[40].mxu0 }
 0x324   : > { %v2439_v1 = vadd.f32 %v2438_v57, %v2437_v58  ;;  %v2415_v2 = vadd.f32 %v2414_v0, %v2279_v63  ;;  %v2860_v3 = vpop.f32.mrb[41].mxu0 }
 0x326   : > { %v2440_v4 = vmul.f32 %v2415_v2, %v1126_v45 }
 0x327   : > { %v2419_v7 = vpop.f32.mrb[42].mxu0 }
 0x328   : > { %v2441_v8 = vadd.f32 %v2440_v4, %v2439_v1  ;;  %v2420_v10 = vadd.f32 %v2419_v7, %v2284_v6  ;;  %v2863_v11 = vpop.f32.mrb[43].mxu0 }
 0x32a   : > { %v2442_v12 = vmul.f32 %v2420_v10, %v1207_v62 }
 0x32b   : > { %v2424_v14 = vpop.f32.mrb[44].mxu0 }
 0x32c   : > { %v2443_v15 = vadd.f32 %v2442_v12, %v2441_v8  ;;  %v2425_v17 = vadd.f32 %v2424_v14, %v2289_v13  ;;  %v2866_v18 = vpop.f32.mrb[45].mxu0 }
 0x32e   : > { %v2444_v19 = vmul.f32 %v2425_v17, %v1288_v5 }
 0x330   : > { %v2445_v23 = vadd.f32 %v2444_v19, %v2443_v15 }
 0x332   : > { %2446 = vst [vmem:[%s530_s20] sm:$0xff] %v2445_v23 }
 0x333 PF: > { %s23_s14 = sadd.s32 1, %s3005_s14   ;;  %s3615_s17 = sld [smem:[#allocation5_spill]] }
 0x334   : > { %p20_p12 = scmp.ge.s32.totalorder %s23_s14, 6   ;;  %s3616_s25 = smov %s2985_s26 }
 0x335   : > { %s3617_s26 = smov %s3131_s21  ;;  %s3618_s27 = smov %s2997_s29 }
 0x336   : > { %s3619_s28 = smov %s3001_s30  ;;  %s3621_s30 = smov %s3627_s16 }
 0x337   :  { %22 = sbr.rel (!%p20_p12) target bundleno = 6 (0x6), region = 177 }
 0x339   : > { %s3620_s29 = smov %s3615_s17 }

</bundles_post_ra>
